<compile_context>
chip_gen: v6e
topology: v6e:2x2x1
jax: 0.10.0
libtpu: 0.0.40
codegen_flags: <defaults>
</compile_context>

<pallas_src>
import math
import functools
from dataclasses import dataclass

import numpy as np
import jax
import jax.numpy as jnp
from jax.experimental import pallas as pl
from jax.experimental.pallas import tpu as pltpu


@dataclass(frozen=True)
class FastAttentionConfig:
    d_model: int = 32
    d_query: int = 16
    d_key: int = 16
    n_heads: int = 2
    rank: int = 4
    use_rff: bool = True
    rff_dim: int = 32
    k_max: int = 8
    lsh_key_dim: int = 16          # must equal d_query == d_key
    lsh_buckets: int = 4
    lsh_bandwidth: float = 4.0
    n_lsh_hashes: int = 3
    dropout: float = 0.0           # eval / dropout disabled (identity)


def optimized_sqrt(n: int) -> float:
    if n & (n - 1) == 0:
        k = n.bit_length() - 1
        return 2 ** (k / 2)
    return math.sqrt(n)


# explicit scoped-VMEM budget, safe on v5e (128 MiB) / v6e (128) / v7x (64)
_VMEM_LIMIT = 32 * 1024 * 1024


def _block_diag(mats):
    """mats: [H, a, b] -> block-diagonal [H*a, H*b] with mats[h] on the diagonal."""
    H, a, b = mats.shape
    eye = jnp.eye(H, dtype=mats.dtype)
    return (eye[:, None, :, None] * mats[:, :, None, :]).reshape(H * a, H * b)


# ---------------------------------------------------------------------------
# Row-tiled linear / QKV / RFF kernels
# ---------------------------------------------------------------------------

def _linear_kernel(x_ref, w_ref, b_ref, o_ref):
    o_ref[...] = (jnp.dot(x_ref[...], w_ref[...],
                          preferred_element_type=jnp.float32) + b_ref[...])


def linear_pallas(x, W, b, block_rows=512):
    """x: [..., Din], W: [Dout, Din] (torch nn.Linear layout), b: [Dout]."""
    lead = x.shape[:-1]
    din = x.shape[-1]
    dout = W.shape[0]
    x2 = x.reshape(-1, din)
    rows = x2.shape[0]
    br = min(block_rows, rows)
    pad = (-rows) % br
    if pad:
        x2 = jnp.pad(x2, ((0, pad), (0, 0)))
    rows_p = x2.shape[0]
    out = pl.pallas_call(
        _linear_kernel,
        grid=(rows_p // br,),
        in_specs=[pl.BlockSpec((br, din), lambda i: (i, 0)),
                  pl.BlockSpec((din, dout), lambda i: (0, 0)),
                  pl.BlockSpec((1, dout), lambda i: (0, 0))],
        out_specs=pl.BlockSpec((br, dout), lambda i: (i, 0)),
        out_shape=jax.ShapeDtypeStruct((rows_p, dout), jnp.float32),
        compiler_params=pltpu.CompilerParams(
            dimension_semantics=("parallel",),
            vmem_limit_bytes=_VMEM_LIMIT),
    )(x2, W.T, b.reshape(1, dout))
    if pad:
        out = out[:rows]
    return out.reshape(*lead, dout)


def _qkv_kernel(x_ref, w_ref, b_ref, o_ref):
    o_ref[0] = (jnp.dot(x_ref[0], w_ref[0],
                        preferred_element_type=jnp.float32) + b_ref[0])


def qkv_project_pallas(query, key, value, Wq, bq, Wk, bk, Wv, bv,
                       block_rows=512):
    """Q/K/V projections in one pallas_call, stacked on a leading grid axis."""
    B, L, Dm = query.shape
    dout = Wq.shape[0]
    assert Wk.shape[0] == dout and Wv.shape[0] == dout
    x = jnp.stack([query.reshape(-1, Dm), key.reshape(-1, Dm),
                   value.reshape(-1, Dm)], axis=0)                # [3, rows, Dm]
    w = jnp.stack([Wq.T, Wk.T, Wv.T], axis=0)                     # [3, Dm, dout]
    bias = jnp.stack([bq, bk, bv], axis=0).reshape(3, 1, dout)
    rows = B * L
    br = min(block_rows, rows)
    pad = (-rows) % br
    if pad:
        x = jnp.pad(x, ((0, 0), (0, pad), (0, 0)))
    rows_p = x.shape[1]
    out = pl.pallas_call(
        _qkv_kernel,
        grid=(3, rows_p // br),
        in_specs=[pl.BlockSpec((1, br, Dm), lambda p, i: (p, i, 0)),
                  pl.BlockSpec((1, Dm, dout), lambda p, i: (p, 0, 0)),
                  pl.BlockSpec((1, 1, dout), lambda p, i: (p, 0, 0))],
        out_specs=pl.BlockSpec((1, br, dout), lambda p, i: (p, i, 0)),
        out_shape=jax.ShapeDtypeStruct((3, rows_p, dout), jnp.float32),
        compiler_params=pltpu.CompilerParams(
            dimension_semantics=("parallel", "parallel"),
            vmem_limit_bytes=_VMEM_LIMIT),
    )(x, w, bias)
    if pad:
        out = out[:, :rows]
    q = out[0].reshape(B, L, dout)
    k = out[1].reshape(B, L, dout)
    v = out[2].reshape(B, L, dout)
    return q, k, v


def _rff_rows_kernel(x_ref, om_ref, b_ref, o_ref, *, scale):
    o_ref[...] = jnp.cos(jnp.dot(x_ref[...], om_ref[...],
                                 preferred_element_type=jnp.float32)
                         + b_ref[...]) * scale


def rff_rows_pallas(x, omega_bd, bias_row, scale, block_rows=512):
    """x: [rows, H*Dk]; omega_bd: [H*Dk, H*R] block-diag; bias_row: [1, H*R].

    Encodes every real key exactly once, all heads in one lane-dense matmul.
    """
    rows, din = x.shape
    dout = omega_bd.shape[1]
    br = min(block_rows, rows)
    pad = (-rows) % br
    if pad:
        x = jnp.pad(x, ((0, pad), (0, 0)))
    rows_p = x.shape[0]
    out = pl.pallas_call(
        functools.partial(_rff_rows_kernel, scale=scale),
        grid=(rows_p // br,),
        in_specs=[pl.BlockSpec((br, din), lambda i: (i, 0)),
                  pl.BlockSpec((din, dout), lambda i: (0, 0)),
                  pl.BlockSpec((1, dout), lambda i: (0, 0))],
        out_specs=pl.BlockSpec((br, dout), lambda i: (i, 0)),
        out_shape=jax.ShapeDtypeStruct((rows_p, dout), jnp.float32),
        compiler_params=pltpu.CompilerParams(
            dimension_semantics=("parallel",),
            vmem_limit_bytes=_VMEM_LIMIT),
    )(x, omega_bd, bias_row)
    if pad:
        out = out[:rows]
    return out


# ---------------------------------------------------------------------------
# Fused attention kernel (in-kernel candidate selection, lane-dense output)
# ---------------------------------------------------------------------------

def _attention_kernel(cand_ref, q_ref, kf_ref, v_ref, omega_ref, bias_ref,
                      wuv_ref, o_ref, *, H, TL, L, K, Dk, F, use_rff, q_scale):
    """One (batch, L-tile) per grid step.

    cand_ref : (1, H, TL, K) int32  candidate key indices (-1 = invalid)
    q_ref    : (1, TL, H*Dq)        lane-dense per-head queries
    kf_ref   : (1, H, L, F)         per-batch key features (VMEM-resident)
    v_ref    : (1, H, L, Dk)        per-batch values       (VMEM-resident)
    omega_ref: (H*Dq, H*F), bias_ref: (1, H*F)   block-diag RFF params
    wuv_ref  : (H*Dk, H*Dm)         block-diagonal U@V
    o_ref    : (1, TL, H*Dm)        head-major concat output (lane-dense store)
    """
    q_all = q_ref[0]                                              # (TL, H*Dq)
    if use_rff:
        qf_all = jnp.cos(jnp.dot(q_all, omega_ref[...],
                                 preferred_element_type=jnp.float32)
                         + bias_ref[...]) * q_scale               # (TL, H*F)
    else:
        qf_all = q_all * q_scale                                  # F == Dq

    wv_parts = []
    for h in range(H):
        qf_h = qf_all[:, h * F:(h + 1) * F]                       # (TL, F)
        kf_h = kf_ref[0, h]                                       # (L, F)
        v_h = v_ref[0, h]                                         # (L, Dk)
        idx = cand_ref[0, h]                                      # (TL, K) int32

        # similarity of each query against ALL keys (one MXU matmul) ...
        s_full = jax.lax.dot_general(qf_h, kf_h, (((1,), (1,)), ((), ())),
                                     preferred_element_type=jnp.float32)  # (TL,L)

        # ... then restrict the softmax to the LSH-selected keys.  Candidate
        # indices are unique per query, so softmax-over-selected-keys equals
        # the per-slot softmax of the reference.  -1 padding never matches.
        # TODO(synk): at large L replace the one-hot selection with a true
        # sublane dynamic gather (or DMA gather) to keep cost O(K) per query.
        key_iota = jax.lax.broadcasted_iota(jnp.int32, (TL, K, L), 2)
        sel = jnp.sum(jnp.where(idx[:, :, None] == key_iota, 1.0, 0.0),
                      axis=1)                                     # (TL, L) in {0,1}

        s_m = jnp.where(sel > 0.5, s_full, -1e30)
        smax = jnp.max(s_m, axis=-1, keepdims=True)
        p = jnp.exp(s_m - smax) * sel
        denom = jnp.sum(p, axis=-1, keepdims=True)
        attn = p / (denom + 1e-30)                                # (TL, L)
        # rows with zero candidates -> all-zero weights (torch gives 0/0=NaN)

        wv_parts.append(jnp.dot(attn, v_h,
                                preferred_element_type=jnp.float32))   # (TL, Dk)

    # concat heads lane-wise, apply block-diagonal U@V in ONE matmul, and do a
    # single lane-dense store of the full (TL, H*Dm) row block.
    wv_all = jnp.concatenate(wv_parts, axis=-1)                   # (TL, H*Dk)
    o_ref[0] = jnp.dot(wv_all, wuv_ref[...],
                       preferred_element_type=jnp.float32)


def attention_heads_pallas(cfg, cand, q_rows, kf, v_heads, omega_bd, bias_cat,
                           wuv_bd, *, q_scale, F, tile_l=128):
    """cand: [B,H,L,K] int32, q_rows: [B,L,H*Dq], kf: [B,H,L,F],
    v_heads: [B,H,L,Dk]  ->  [B, L, H*Dm] (head-major concat)."""
    B, H, L, Dk = v_heads.shape
    K = cfg.k_max
    Dq = cfg.d_query
    Dm = cfg.d_model

    TL = L if L <= tile_l else tile_l
    pad = (-L) % TL
    Lp = L + pad
    if pad:
        q_rows = jnp.pad(q_rows, ((0, 0), (0, pad), (0, 0)))
        cand = jnp.pad(cand, ((0, 0), (0, 0), (0, pad), (0, 0)),
                       constant_values=-1)

    kern = functools.partial(_attention_kernel, H=H, TL=TL, L=L, K=K, Dk=Dk,
                             F=F, use_rff=cfg.use_rff, q_scale=q_scale)
    out = pl.pallas_call(
        kern,
        out_shape=jax.ShapeDtypeStruct((B, Lp, H * Dm), jnp.float32),
        grid=(B, Lp // TL),
        in_specs=[
            pl.BlockSpec((1, H, TL, K), lambda b, t: (b, 0, t, 0)),   # cand idx
            pl.BlockSpec((1, TL, H * Dq), lambda b, t: (b, t, 0)),    # queries
            pl.BlockSpec((1, H, L, F), lambda b, t: (b, 0, 0, 0)),    # key feats
            pl.BlockSpec((1, H, L, Dk), lambda b, t: (b, 0, 0, 0)),   # values
            pl.BlockSpec((H * Dq, H * F), lambda b, t: (0, 0)),       # omega bd
            pl.BlockSpec((1, H * F), lambda b, t: (0, 0)),            # rff bias
            pl.BlockSpec((H * Dk, H * Dm), lambda b, t: (0, 0)),      # U@V bd
        ],
        out_specs=pl.BlockSpec((1, TL, H * Dm), lambda b, t: (b, t, 0)),
        compiler_params=pltpu.CompilerParams(
            dimension_semantics=("parallel", "parallel"),
            vmem_limit_bytes=_VMEM_LIMIT),
    )(cand, q_rows, kf, v_heads, omega_bd, bias_cat, wuv_bd)
    if pad:
        out = out[:, :L]
    return out


# ---------------------------------------------------------------------------
# Plain-JAX glue: LSH candidate finding (data-dependent index logic)
# ---------------------------------------------------------------------------
# TODO(synk): the LSH candidate search (hash-bucket matching + first-k_max
# index fill) is irregular first-nonzero selection with no clean Pallas
# equivalent; it stays in plain JAX and only the compact indices reach VMEM.

def find_candidates(cfg, qh, kh, rand_vecs):
    """qh, kh: [B, L, d]; returns candidate key indices [B, L, k_max] (-1 pad)."""
    B, L, _ = qh.shape
    qbin = (qh > 0).astype(jnp.float32)
    kbin = (kh > 0).astype(jnp.float32)
    qhash = jnp.floor((qbin @ rand_vecs) / cfg.lsh_bandwidth) % cfg.lsh_buckets
    khash = jnp.floor((kbin @ rand_vecs) / cfg.lsh_bandwidth) % cfg.lsh_buckets
    matches = jnp.all(qhash[:, :, None, :] == khash[:, None, :, :], axis=-1)
    j = jnp.arange(L, dtype=jnp.int32)
    sort_key = jnp.where(matches, j[None, None, :], L + j[None, None, :])
    first = jnp.sort(sort_key, axis=-1)[..., :cfg.k_max]
    nmatch = jnp.sum(matches.astype(jnp.int32), axis=-1, keepdims=True)
    cand = jnp.where(jnp.arange(cfg.k_max)[None, None, :] < nmatch, first, -1)
    return cand


# ---------------------------------------------------------------------------
# Full forward pass
# ---------------------------------------------------------------------------

def fast_attention_forward(cfg, params, query, key, value):
    B, L, _ = query.shape
    H, Dq, Dk, Dm = cfg.n_heads, cfg.d_query, cfg.d_key, cfg.d_model
    R = cfg.rff_dim

    # --- Q/K/V projections ---------------------------------------------------
    if Dq == Dk:
        q_lin, k_lin, v_lin = qkv_project_pallas(
            query, key, value,
            params["Wq"], params["bq"], params["Wk"], params["bk"],
            params["Wv"], params["bv"])
    else:
        q_lin = linear_pallas(query, params["Wq"], params["bq"])
        k_lin = linear_pallas(key, params["Wk"], params["bk"])
        v_lin = linear_pallas(value, params["Wv"], params["bv"])

    rff_scale = math.sqrt(2.0 / R)
    sim_scale = optimized_sqrt(R if cfg.use_rff else Dk)

    # --- key features encoded once per key (row-tiled, block-diag omega) -----
    if cfg.use_rff:
        F = R
        omega_bd = _block_diag(params["omega"])                   # (H*Dk, H*R)
        bias_cat = params["obias"].reshape(1, H * R)
        kf_rows = rff_rows_pallas(k_lin.reshape(B * L, H * Dk),
                                  omega_bd, bias_cat, rff_scale)  # [B*L, H*R]
        kf = kf_rows.reshape(B, L, H, R).transpose(0, 2, 1, 3)    # [B,H,L,R]
        q_scale = rff_scale / sim_scale    # fold 1/sim_scale into query feats
    else:
        F = Dk
        omega_bd = jnp.zeros((H * Dq, H * F), jnp.float32)        # unused
        bias_cat = jnp.zeros((1, H * F), jnp.float32)             # unused
        kf = k_lin.reshape(B, L, H, Dk).transpose(0, 2, 1, 3)
        q_scale = 1.0 / sim_scale

    v_heads = v_lin.reshape(B, L, H, Dk).transpose(0, 2, 1, 3)    # [B,H,L,Dk]

    # --- LSH candidate search (plain-JAX glue, indices only) ------------------
    qh = q_lin.reshape(B, L, H, Dq).transpose(0, 2, 1, 3)
    kh = k_lin.reshape(B, L, H, Dk).transpose(0, 2, 1, 3)
    cand = jnp.stack(
        [find_candidates(cfg, qh[:, h], kh[:, h], params["lsh_vecs"][h])
         for h in range(H)], axis=1).astype(jnp.int32)            # [B,H,L,K]

    # per-head low-rank up-projection U@V, block-diagonal for one matmul + one
    # lane-dense output store inside the kernel
    wuv = jnp.einsum("hdr,hrm->hdm", params["U"], params["V"])    # [H,Dk,Dm]
    wuv_bd = _block_diag(wuv)                                     # (H*Dk, H*Dm)

    head_out = attention_heads_pallas(cfg, cand, q_lin, kf, v_heads,
                                      omega_bd, bias_cat, wuv_bd,
                                      q_scale=q_scale, F=F)       # [B, L, H*Dm]

    out = linear_pallas(head_out, params["Wo"], params["bo"])     # [B, L, Dm]
    return out  # dropout is identity (p = 0 / eval mode)


# ---------------------------------------------------------------------------
# Deterministic parameter init + pure-JAX reference for validation
# ---------------------------------------------------------------------------

def init_params(cfg, key):
    H = cfg.n_heads
    keys = jax.random.split(key, 9)

    def xavier(k, shape):
        fan_out, fan_in = shape
        bound = math.sqrt(6.0 / (fan_in + fan_out))
        return jax.random.uniform(k, shape, jnp.float32, -bound, bound)

    return {
        "Wq": xavier(keys[0], (cfg.d_query * H, cfg.d_model)),
        "bq": jnp.zeros((cfg.d_query * H,), jnp.float32),
        "Wk": xavier(keys[1], (cfg.d_key * H, cfg.d_model)),
        "bk": jnp.zeros((cfg.d_key * H,), jnp.float32),
        "Wv": xavier(keys[2], (cfg.d_key * H, cfg.d_model)),
        "bv": jnp.zeros((cfg.d_key * H,), jnp.float32),
        "Wo": xavier(keys[3], (cfg.d_model, cfg.d_model * H)),
        "bo": jnp.zeros((cfg.d_model,), jnp.float32),
        "U": 0.02 * jax.random.normal(keys[4], (H, cfg.d_key, cfg.rank), jnp.float32),
        "V": 0.02 * jax.random.normal(keys[5], (H, cfg.rank, cfg.d_model), jnp.float32),
        "omega": jax.random.normal(keys[6], (H, cfg.d_key, cfg.rff_dim), jnp.float32),
        "obias": jax.random.uniform(keys[7], (H, 1, cfg.rff_dim), jnp.float32) * 2.0 * math.pi,
        "lsh_vecs": jax.random.normal(keys[8], (H, cfg.lsh_key_dim, cfg.n_lsh_hashes), jnp.float32),
    }


def reference_forward(cfg, params, query, key, value):
    B, L, _ = query.shape
    H = cfg.n_heads

    def lin(x, W, b):
        return x @ W.T + b

    q = lin(query, params["Wq"], params["bq"]).reshape(B, L, H, cfg.d_query).transpose(0, 2, 1, 3)
    k = lin(key, params["Wk"], params["bk"]).reshape(B, L, H, cfg.d_key).transpose(0, 2, 1, 3)
    v = lin(value, params["Wv"], params["bv"]).reshape(B, L, H, cfg.d_key).transpose(0, 2, 1, 3)

    heads = []
    for h in range(H):
        cand = find_candidates(cfg, q[:, h], k[:, h], params["lsh_vecs"][h])
        mask = cand != -1
        safe = jnp.where(mask, cand, 0)
        ck = jax.vmap(lambda kb, sb: kb[sb])(k[:, h], safe)
        cv = jax.vmap(lambda vb, sb: vb[sb])(v[:, h], safe)
        if cfg.use_rff:
            rs = math.sqrt(2.0 / cfg.rff_dim)
            qf = jnp.cos(q[:, h] @ params["omega"][h] + params["obias"][h, 0]) * rs
            ckf = jnp.cos(ck @ params["omega"][h] + params["obias"][h, 0]) * rs
            scale = optimized_sqrt(cfg.rff_dim)
            sim = jnp.einsum("blf,blkf->blk", qf, ckf) / scale
        else:
            scale = optimized_sqrt(cfg.d_key)
            sim = jnp.einsum("bld,blkd->blk", q[:, h], ck) / scale
        sim = jnp.where(mask, sim, -jnp.inf)
        attn = jax.nn.softmax(sim, axis=-1)
        vp = (cv @ params["U"][h]) @ params["V"][h]
        heads.append(jnp.sum(attn[..., None] * vp, axis=2))
    concat = jnp.concatenate(heads, axis=-1)
    return lin(concat, params["Wo"], params["bo"])


if __name__ == "__main__":
    cfg = FastAttentionConfig()
    root = jax.random.PRNGKey(0)
    kp, kq, kk, kv = jax.random.split(root, 4)
    params = init_params(cfg, kp)

    B, L = 2, 8
    query = jax.random.normal(kq, (B, L, cfg.d_model), jnp.float32)
    key_in = jax.random.normal(kk, (B, L, cfg.d_model), jnp.float32)
    value = jax.random.normal(kv, (B, L, cfg.d_model), jnp.float32)

    fwd = jax.jit(functools.partial(fast_attention_forward, cfg))
    out = jax.block_until_ready(fwd(params, query, key_in, value))
    out_np = np.asarray(out)
    assert not np.any(np.isnan(out_np)), "kernel produced NaN"

    ref = np.asarray(reference_forward(cfg, params, query, key_in, value))
    # Rows where a head finds zero LSH candidates are 0/0 (= NaN) in the torch
    # module; the kernel defines them as zero contribution.  Compare only on
    # well-defined rows.
    valid = ~np.any(np.isnan(ref), axis=-1, keepdims=True)
    np.testing.assert_allclose(out_np * valid, np.nan_to_num(ref) * valid,
                               rtol=2e-2, atol=2e-2)
    print("KERNEL_OK")
</pallas_src>

<mosaic_0001>
module attributes {stable_mosaic.version = 11 : i64} {
  func.func @_qkv_kernel(%arg0: i32, %arg1: i32, %arg2: memref<1x16x32xf32, #tpu.memory_space<vmem>>, %arg3: memref<1x32x32xf32, #tpu.memory_space<vmem>>, %arg4: memref<1x1x32xf32, #tpu.memory_space<vmem>>, %arg5: memref<1x16x32xf32, #tpu.memory_space<vmem>>) attributes {dimension_semantics = [#tpu.dimension_semantics<parallel>, #tpu.dimension_semantics<parallel>], iteration_bounds = array<i64: 3, 1>, scalar_prefetch = 0 : i64, scratch_operands = 0 : i64, tpu.core_type = #tpu.core_type<tc>, window_params = [{transform_indices = @transform_0, window_bounds = array<i64: 1, 16, 32>}, {transform_indices = @transform_1, window_bounds = array<i64: 1, 32, 32>}, {transform_indices = @transform_2, window_bounds = array<i64: 1, 1, 32>}, {transform_indices = @transform_3, window_bounds = array<i64: 1, 16, 32>}]} {
    %c0 = arith.constant 0 : index
    %c0_0 = arith.constant 0 : index
    %c0_1 = arith.constant 0 : index
    %0 = vector.load %arg2[%c0, %c0_0, %c0_1] : memref<1x16x32xf32, #tpu.memory_space<vmem>>, vector<1x16x32xf32>
    %1 = vector.shape_cast %0 : vector<1x16x32xf32> to vector<16x32xf32>
    %c0_2 = arith.constant 0 : index
    %c0_3 = arith.constant 0 : index
    %c0_4 = arith.constant 0 : index
    %2 = vector.load %arg3[%c0_2, %c0_3, %c0_4] : memref<1x32x32xf32, #tpu.memory_space<vmem>>, vector<1x32x32xf32>
    %3 = vector.shape_cast %2 : vector<1x32x32xf32> to vector<32x32xf32>
    %cst = arith.constant dense<0.000000e+00> : vector<16x32xf32>
    %4 = tpu.matmul %1, %3, %cst {dimension_numbers = #tpu.dot_dimension_numbers<[1], [0], [0], [1], [0, 0, 1, 1], [], []>} : vector<16x32xf32>, vector<32x32xf32>, vector<16x32xf32> -> vector<16x32xf32>
    %c0_5 = arith.constant 0 : index
    %c0_6 = arith.constant 0 : index
    %c0_7 = arith.constant 0 : index
    %5 = vector.load %arg4[%c0_5, %c0_6, %c0_7] : memref<1x1x32xf32, #tpu.memory_space<vmem>>, vector<1x1x32xf32>
    %6 = vector.shape_cast %5 : vector<1x1x32xf32> to vector<1x32xf32>
    %7 = vector.broadcast %6 : vector<1x32xf32> to vector<16x32xf32>
    %8 = arith.addf %4, %7 : vector<16x32xf32>
    %c0_8 = arith.constant 0 : index
    %c0_9 = arith.constant 0 : index
    %c0_10 = arith.constant 0 : index
    %9 = vector.load %arg5[%c0_8, %c0_9, %c0_10] : memref<1x16x32xf32, #tpu.memory_space<vmem>>, vector<1x16x32xf32>
    %10 = vector.shape_cast %9 : vector<1x16x32xf32> to vector<16x32xf32>
    %11 = vector.shape_cast %8 : vector<16x32xf32> to vector<1x16x32xf32>
    tpu.vector_store %arg5[%c0_8, %c0_9, %c0_10], %11 {strides = array<i32>} : memref<1x16x32xf32, #tpu.memory_space<vmem>>, vector<1x16x32xf32>,
    return
  }
  func.func @transform_0(%arg0: i32, %arg1: i32) -> (i32, i32, i32) {
    %c0_i32 = arith.constant 0 : i32
    %c0_i32_0 = arith.constant 0 : i32
    return %arg0, %arg1, %c0_i32 : i32, i32, i32
  }
  func.func @transform_1(%arg0: i32, %arg1: i32) -> (i32, i32, i32) {
    %c0_i32 = arith.constant 0 : i32
    %c0_i32_0 = arith.constant 0 : i32
    %c0_i32_1 = arith.constant 0 : i32
    return %arg0, %c0_i32, %c0_i32_0 : i32, i32, i32
  }
  func.func @transform_2(%arg0: i32, %arg1: i32) -> (i32, i32, i32) {
    %c0_i32 = arith.constant 0 : i32
    %c0_i32_0 = arith.constant 0 : i32
    %c0_i32_1 = arith.constant 0 : i32
    return %arg0, %c0_i32, %c0_i32_0 : i32, i32, i32
  }
  func.func @transform_3(%arg0: i32, %arg1: i32) -> (i32, i32, i32) {
    %c0_i32 = arith.constant 0 : i32
    %c0_i32_0 = arith.constant 0 : i32
    return %arg0, %arg1, %c0_i32 : i32, i32, i32
  }
}

module attributes {stable_mosaic.version = 11 : i64} {
  func.func @_rff_rows_kernel(%arg0: i32, %arg1: memref<16x32xf32, #tpu.memory_space<vmem>>, %arg2: memref<32x64xf32, #tpu.memory_space<vmem>>, %arg3: memref<1x64xf32, #tpu.memory_space<vmem>>, %arg4: memref<16x64xf32, #tpu.memory_space<vmem>>) attributes {dimension_semantics = [#tpu.dimension_semantics<parallel>], iteration_bounds = array<i64: 1>, scalar_prefetch = 0 : i64, scratch_operands = 0 : i64, tpu.core_type = #tpu.core_type<tc>, window_params = [{transform_indices = @transform_0, window_bounds = array<i64: 16, 32>}, {pipeline_mode = #tpu.pipeline_mode<synchronous>, transform_indices = @transform_1, window_bounds = array<i64: 32, 64>}, {pipeline_mode = #tpu.pipeline_mode<synchronous>, transform_indices = @transform_2, window_bounds = array<i64: 1, 64>}, {transform_indices = @transform_3, window_bounds = array<i64: 16, 64>}]} {
    %c0 = arith.constant 0 : index
    %c0_0 = arith.constant 0 : index
    %0 = vector.load %arg1[%c0, %c0_0] : memref<16x32xf32, #tpu.memory_space<vmem>>, vector<16x32xf32>
    %c0_1 = arith.constant 0 : index
    %c0_2 = arith.constant 0 : index
    %1 = vector.load %arg2[%c0_1, %c0_2] : memref<32x64xf32, #tpu.memory_space<vmem>>, vector<32x64xf32>
    %cst = arith.constant dense<0.000000e+00> : vector<16x64xf32>
    %2 = tpu.matmul %0, %1, %cst {dimension_numbers = #tpu.dot_dimension_numbers<[1], [0], [0], [1], [0, 0, 1, 1], [], []>} : vector<16x32xf32>, vector<32x64xf32>, vector<16x64xf32> -> vector<16x64xf32>
    %c0_3 = arith.constant 0 : index
    %c0_4 = arith.constant 0 : index
    %3 = vector.load %arg3[%c0_3, %c0_4] : memref<1x64xf32, #tpu.memory_space<vmem>>, vector<1x64xf32>
    %4 = vector.broadcast %3 : vector<1x64xf32> to vector<16x64xf32>
    %5 = arith.addf %2, %4 : vector<16x64xf32>
    %6 = math.cos %5 : vector<16x64xf32>
    %cst_5 = arith.constant 2.500000e-01 : f32
    %7 = vector.broadcast %cst_5 : f32 to vector<16x64xf32>
    %8 = arith.mulf %6, %7 : vector<16x64xf32>
    %c0_6 = arith.constant 0 : index
    %c0_7 = arith.constant 0 : index
    %9 = vector.load %arg4[%c0_6, %c0_7] : memref<16x64xf32, #tpu.memory_space<vmem>>, vector<16x64xf32>
    tpu.vector_store %arg4[%c0_6, %c0_7], %8 {strides = array<i32>} : memref<16x64xf32, #tpu.memory_space<vmem>>, vector<16x64xf32>,
    return
  }
  func.func @transform_0(%arg0: i32) -> (i32, i32) {
    %c0_i32 = arith.constant 0 : i32
    %c0_i32_0 = arith.constant 0 : i32
    return %arg0, %c0_i32 : i32, i32
  }
  func.func @transform_1(%arg0: i32) -> (i32, i32) {
    %c0_i32 = arith.constant 0 : i32
    %c0_i32_0 = arith.constant 0 : i32
    %c0_i32_1 = arith.constant 0 : i32
    return %c0_i32, %c0_i32_0 : i32, i32
  }
  func.func @transform_2(%arg0: i32) -> (i32, i32) {
    %c0_i32 = arith.constant 0 : i32
    %c0_i32_0 = arith.constant 0 : i32
    %c0_i32_1 = arith.constant 0 : i32
    return %c0_i32, %c0_i32_0 : i32, i32
  }
  func.func @transform_3(%arg0: i32) -> (i32, i32) {
    %c0_i32 = arith.constant 0 : i32
    %c0_i32_0 = arith.constant 0 : i32
    return %arg0, %c0_i32 : i32, i32
  }
}

module attributes {stable_mosaic.version = 11 : i64} {
  func.func @_attention_kernel(%arg0: i32, %arg1: i32, %arg2: memref<1x2x8x8xi32, #tpu.memory_space<vmem>>, %arg3: memref<1x8x32xf32, #tpu.memory_space<vmem>>, %arg4: memref<1x2x8x32xf32, #tpu.memory_space<vmem>>, %arg5: memref<1x2x8x16xf32, #tpu.memory_space<vmem>>, %arg6: memref<32x64xf32, #tpu.memory_space<vmem>>, %arg7: memref<1x64xf32, #tpu.memory_space<vmem>>, %arg8: memref<32x64xf32, #tpu.memory_space<vmem>>, %arg9: memref<1x8x64xf32, #tpu.memory_space<vmem>>) attributes {dimension_semantics = [#tpu.dimension_semantics<parallel>, #tpu.dimension_semantics<parallel>], iteration_bounds = array<i64: 2, 1>, scalar_prefetch = 0 : i64, scratch_operands = 0 : i64, tpu.core_type = #tpu.core_type<tc>, window_params = [{transform_indices = @transform_0, window_bounds = array<i64: 1, 2, 8, 8>}, {transform_indices = @transform_1, window_bounds = array<i64: 1, 8, 32>}, {transform_indices = @transform_2, window_bounds = array<i64: 1, 2, 8, 32>}, {transform_indices = @transform_3, window_bounds = array<i64: 1, 2, 8, 16>}, {pipeline_mode = #tpu.pipeline_mode<synchronous>, transform_indices = @transform_4, window_bounds = array<i64: 32, 64>}, {pipeline_mode = #tpu.pipeline_mode<synchronous>, transform_indices = @transform_5, window_bounds = array<i64: 1, 64>}, {pipeline_mode = #tpu.pipeline_mode<synchronous>, transform_indices = @transform_6, window_bounds = array<i64: 32, 64>}, {transform_indices = @transform_7, window_bounds = array<i64: 1, 8, 64>}]} {
    %c0 = arith.constant 0 : index
    %c0_0 = arith.constant 0 : index
    %c0_1 = arith.constant 0 : index
    %0 = vector.load %arg3[%c0, %c0_0, %c0_1] : memref<1x8x32xf32, #tpu.memory_space<vmem>>, vector<1x8x32xf32>
    %1 = vector.shape_cast %0 : vector<1x8x32xf32> to vector<8x32xf32>
    %c0_2 = arith.constant 0 : index
    %c0_3 = arith.constant 0 : index
    %2 = vector.load %arg6[%c0_2, %c0_3] : memref<32x64xf32, #tpu.memory_space<vmem>>, vector<32x64xf32>
    %cst = arith.constant dense<0.000000e+00> : vector<8x64xf32>
    %3 = tpu.matmul %1, %2, %cst {dimension_numbers = #tpu.dot_dimension_numbers<[1], [0], [0], [1], [0, 0, 1, 1], [], []>} : vector<8x32xf32>, vector<32x64xf32>, vector<8x64xf32> -> vector<8x64xf32>
    %c0_4 = arith.constant 0 : index
    %c0_5 = arith.constant 0 : index
    %4 = vector.load %arg7[%c0_4, %c0_5] : memref<1x64xf32, #tpu.memory_space<vmem>>, vector<1x64xf32>
    %5 = vector.broadcast %4 : vector<1x64xf32> to vector<8x64xf32>
    %6 = arith.addf %3, %5 : vector<8x64xf32>
    %7 = math.cos %6 : vector<8x64xf32>
    %cst_6 = arith.constant 0.0441941731 : f32
    %8 = vector.broadcast %cst_6 : f32 to vector<8x64xf32>
    %9 = arith.mulf %7, %8 : vector<8x64xf32>
    %10 = vector.extract_strided_slice %9 {offsets = [0, 0], sizes = [8, 32], strides = [1, 1]} : vector<8x64xf32> to vector<8x32xf32>
    %c0_7 = arith.constant 0 : index
    %c0_8 = arith.constant 0 : index
    %c0_9 = arith.constant 0 : index
    %c0_10 = arith.constant 0 : index
    %11 = vector.load %arg4[%c0_7, %c0_8, %c0_9, %c0_10] : memref<1x2x8x32xf32, #tpu.memory_space<vmem>>, vector<1x1x8x32xf32>
    %12 = vector.shape_cast %11 : vector<1x1x8x32xf32> to vector<8x32xf32>
    %c0_11 = arith.constant 0 : index
    %c0_12 = arith.constant 0 : index
    %c0_13 = arith.constant 0 : index
    %c0_14 = arith.constant 0 : index
    %13 = vector.load %arg5[%c0_11, %c0_12, %c0_13, %c0_14] : memref<1x2x8x16xf32, #tpu.memory_space<vmem>>, vector<1x1x8x16xf32>
    %14 = vector.shape_cast %13 : vector<1x1x8x16xf32> to vector<8x16xf32>
    %c0_15 = arith.constant 0 : index
    %c0_16 = arith.constant 0 : index
    %c0_17 = arith.constant 0 : index
    %c0_18 = arith.constant 0 : index
    %15 = vector.load %arg2[%c0_15, %c0_16, %c0_17, %c0_18] : memref<1x2x8x8xi32, #tpu.memory_space<vmem>>, vector<1x1x8x8xi32>
    %16 = vector.shape_cast %15 : vector<1x1x8x8xi32> to vector<8x8xi32>
    %cst_19 = arith.constant dense<0.000000e+00> : vector<8x8xf32>
    %17 = tpu.matmul %10, %12, %cst_19 {dimension_numbers = #tpu.dot_dimension_numbers<[1], [1], [0], [0], [0, 0, 1, 0], [], []>} : vector<8x32xf32>, vector<8x32xf32>, vector<8x8xf32> -> vector<8x8xf32>
    %18 = tpu.iota {dimensions = array<i32: 2>} : vector<8x8x8xi32>
    %19 = vector.shape_cast %16 : vector<8x8xi32> to vector<8x8x1xi32>
    %20 = vector.broadcast %19 : vector<8x8x1xi32> to vector<8x8x8xi32>
    %21 = arith.cmpi eq, %20, %18 : vector<8x8x8xi32>
    %cst_20 = arith.constant 1.000000e+00 : f32
    %cst_21 = arith.constant 0.000000e+00 : f32
    %22 = vector.broadcast %cst_20 : f32 to vector<8x8x8xf32>
    %23 = vector.broadcast %cst_21 : f32 to vector<8x8x8xf32>
    %24 = arith.select %21, %22, %23 : vector<8x8x8xi1>, vector<8x8x8xf32>
    %cst_22 = arith.constant dense<0.000000e+00> : vector<8x8xf32>
    %25 = vector.multi_reduction <add>, %24, %cst_22 [1] : vector<8x8x8xf32> to vector<8x8xf32>
    %cst_23 = arith.constant 5.000000e-01 : f32
    %26 = vector.broadcast %cst_23 : f32 to vector<8x8xf32>
    %27 = arith.cmpf ogt, %25, %26 : vector<8x8xf32>
    %cst_24 = arith.constant -1.000000e+30 : f32
    %28 = vector.broadcast %cst_24 : f32 to vector<8x8xf32>
    %29 = arith.select %27, %17, %28 : vector<8x8xi1>, vector<8x8xf32>
    %cst_25 = arith.constant dense<0xFF800000> : vector<8xf32>
    %30 = vector.multi_reduction <maximumf>, %29, %cst_25 [1] : vector<8x8xf32> to vector<8xf32>
    %31 = vector.shape_cast %30 : vector<8xf32> to vector<8x1xf32>
    %32 = vector.broadcast %31 : vector<8x1xf32> to vector<8x8xf32>
    %33 = arith.subf %29, %32 : vector<8x8xf32>
    %34 = math.exp %33 : vector<8x8xf32>
    %35 = arith.mulf %34, %25 : vector<8x8xf32>
    %cst_26 = arith.constant dense<0.000000e+00> : vector<8xf32>
    %36 = vector.multi_reduction <add>, %35, %cst_26 [1] : vector<8x8xf32> to vector<8xf32>
    %37 = vector.shape_cast %36 : vector<8xf32> to vector<8x1xf32>
    %cst_27 = arith.constant 1.000000e-30 : f32
    %38 = vector.broadcast %cst_27 : f32 to vector<8x1xf32>
    %39 = arith.addf %37, %38 : vector<8x1xf32>
    %40 = vector.broadcast %39 : vector<8x1xf32> to vector<8x8xf32>
    %41 = arith.divf %35, %40 : vector<8x8xf32>
    %cst_28 = arith.constant dense<0.000000e+00> : vector<8x16xf32>
    %42 = tpu.matmul %41, %14, %cst_28 {dimension_numbers = #tpu.dot_dimension_numbers<[1], [0], [0], [1], [0, 0, 1, 1], [], []>} : vector<8x8xf32>, vector<8x16xf32>, vector<8x16xf32> -> vector<8x16xf32>
    %43 = vector.extract_strided_slice %9 {offsets = [0, 32], sizes = [8, 32], strides = [1, 1]} : vector<8x64xf32> to vector<8x32xf32>
    %c0_29 = arith.constant 0 : index
    %c1 = arith.constant 1 : index
    %c0_30 = arith.constant 0 : index
    %c0_31 = arith.constant 0 : index
    %44 = vector.load %arg4[%c0_29, %c1, %c0_30, %c0_31] : memref<1x2x8x32xf32, #tpu.memory_space<vmem>>, vector<1x1x8x32xf32>
    %45 = vector.shape_cast %44 : vector<1x1x8x32xf32> to vector<8x32xf32>
    %c0_32 = arith.constant 0 : index
    %c1_33 = arith.constant 1 : index
    %c0_34 = arith.constant 0 : index
    %c0_35 = arith.constant 0 : index
    %46 = vector.load %arg5[%c0_32, %c1_33, %c0_34, %c0_35] : memref<1x2x8x16xf32, #tpu.memory_space<vmem>>, vector<1x1x8x16xf32>
    %47 = vector.shape_cast %46 : vector<1x1x8x16xf32> to vector<8x16xf32>
    %c0_36 = arith.constant 0 : index
    %c1_37 = arith.constant 1 : index
    %c0_38 = arith.constant 0 : index
    %c0_39 = arith.constant 0 : index
    %48 = vector.load %arg2[%c0_36, %c1_37, %c0_38, %c0_39] : memref<1x2x8x8xi32, #tpu.memory_space<vmem>>, vector<1x1x8x8xi32>
    %49 = vector.shape_cast %48 : vector<1x1x8x8xi32> to vector<8x8xi32>
    %cst_40 = arith.constant dense<0.000000e+00> : vector<8x8xf32>
    %50 = tpu.matmul %43, %45, %cst_40 {dimension_numbers = #tpu.dot_dimension_numbers<[1], [1], [0], [0], [0, 0, 1, 0], [], []>} : vector<8x32xf32>, vector<8x32xf32>, vector<8x8xf32> -> vector<8x8xf32>
    %51 = tpu.iota {dimensions = array<i32: 2>} : vector<8x8x8xi32>
    %52 = vector.shape_cast %49 : vector<8x8xi32> to vector<8x8x1xi32>
    %53 = vector.broadcast %52 : vector<8x8x1xi32> to vector<8x8x8xi32>
    %54 = arith.cmpi eq, %53, %51 : vector<8x8x8xi32>
    %cst_41 = arith.constant 1.000000e+00 : f32
    %cst_42 = arith.constant 0.000000e+00 : f32
    %55 = vector.broadcast %cst_41 : f32 to vector<8x8x8xf32>
    %56 = vector.broadcast %cst_42 : f32 to vector<8x8x8xf32>
    %57 = arith.select %54, %55, %56 : vector<8x8x8xi1>, vector<8x8x8xf32>
    %cst_43 = arith.constant dense<0.000000e+00> : vector<8x8xf32>
    %58 = vector.multi_reduction <add>, %57, %cst_43 [1] : vector<8x8x8xf32> to vector<8x8xf32>
    %cst_44 = arith.constant 5.000000e-01 : f32
    %59 = vector.broadcast %cst_44 : f32 to vector<8x8xf32>
    %60 = arith.cmpf ogt, %58, %59 : vector<8x8xf32>
    %cst_45 = arith.constant -1.000000e+30 : f32
    %61 = vector.broadcast %cst_45 : f32 to vector<8x8xf32>
    %62 = arith.select %60, %50, %61 : vector<8x8xi1>, vector<8x8xf32>
    %cst_46 = arith.constant dense<0xFF800000> : vector<8xf32>
    %63 = vector.multi_reduction <maximumf>, %62, %cst_46 [1] : vector<8x8xf32> to vector<8xf32>
    %64 = vector.shape_cast %63 : vector<8xf32> to vector<8x1xf32>
    %65 = vector.broadcast %64 : vector<8x1xf32> to vector<8x8xf32>
    %66 = arith.subf %62, %65 : vector<8x8xf32>
    %67 = math.exp %66 : vector<8x8xf32>
    %68 = arith.mulf %67, %58 : vector<8x8xf32>
    %cst_47 = arith.constant dense<0.000000e+00> : vector<8xf32>
    %69 = vector.multi_reduction <add>, %68, %cst_47 [1] : vector<8x8xf32> to vector<8xf32>
    %70 = vector.shape_cast %69 : vector<8xf32> to vector<8x1xf32>
    %cst_48 = arith.constant 1.000000e-30 : f32
    %71 = vector.broadcast %cst_48 : f32 to vector<8x1xf32>
    %72 = arith.addf %70, %71 : vector<8x1xf32>
    %73 = vector.broadcast %72 : vector<8x1xf32> to vector<8x8xf32>
    %74 = arith.divf %68, %73 : vector<8x8xf32>
    %cst_49 = arith.constant dense<0.000000e+00> : vector<8x16xf32>
    %75 = tpu.matmul %74, %47, %cst_49 {dimension_numbers = #tpu.dot_dimension_numbers<[1], [0], [0], [1], [0, 0, 1, 1], [], []>} : vector<8x8xf32>, vector<8x16xf32>, vector<8x16xf32> -> vector<8x16xf32>
    %76 = tpu.concatenate %42, %75 in 1 : vector<8x16xf32>, vector<8x16xf32> -> vector<8x32xf32>
    %c0_50 = arith.constant 0 : index
    %c0_51 = arith.constant 0 : index
    %77 = vector.load %arg8[%c0_50, %c0_51] : memref<32x64xf32, #tpu.memory_space<vmem>>, vector<32x64xf32>
    %cst_52 = arith.constant dense<0.000000e+00> : vector<8x64xf32>
    %78 = tpu.matmul %76, %77, %cst_52 {dimension_numbers = #tpu.dot_dimension_numbers<[1], [0], [0], [1], [0, 0, 1, 1], [], []>} : vector<8x32xf32>, vector<32x64xf32>, vector<8x64xf32> -> vector<8x64xf32>
    %c0_53 = arith.constant 0 : index
    %c0_54 = arith.constant 0 : index
    %c0_55 = arith.constant 0 : index
    %79 = vector.load %arg9[%c0_53, %c0_54, %c0_55] : memref<1x8x64xf32, #tpu.memory_space<vmem>>, vector<1x8x64xf32>
    %80 = vector.shape_cast %79 : vector<1x8x64xf32> to vector<8x64xf32>
    %81 = vector.shape_cast %78 : vector<8x64xf32> to vector<1x8x64xf32>
    tpu.vector_store %arg9[%c0_53, %c0_54, %c0_55], %81 {strides = array<i32>} : memref<1x8x64xf32, #tpu.memory_space<vmem>>, vector<1x8x64xf32>,
    return
  }
  func.func @transform_0(%arg0: i32, %arg1: i32) -> (i32, i32, i32, i32) {
    %c0_i32 = arith.constant 0 : i32
    %c0_i32_0 = arith.constant 0 : i32
    %c0_i32_1 = arith.constant 0 : i32
    return %arg0, %c0_i32, %arg1, %c0_i32_0 : i32, i32, i32, i32
  }
  func.func @transform_1(%arg0: i32, %arg1: i32) -> (i32, i32, i32) {
    %c0_i32 = arith.constant 0 : i32
    %c0_i32_0 = arith.constant 0 : i32
    return %arg0, %arg1, %c0_i32 : i32, i32, i32
  }
  func.func @transform_2(%arg0: i32, %arg1: i32) -> (i32, i32, i32, i32) {
    %c0_i32 = arith.constant 0 : i32
    %c0_i32_0 = arith.constant 0 : i32
    %c0_i32_1 = arith.constant 0 : i32
    %c0_i32_2 = arith.constant 0 : i32
    return %arg0, %c0_i32, %c0_i32_0, %c0_i32_1 : i32, i32, i32, i32
  }
  func.func @transform_3(%arg0: i32, %arg1: i32) -> (i32, i32, i32, i32) {
    %c0_i32 = arith.constant 0 : i32
    %c0_i32_0 = arith.constant 0 : i32
    %c0_i32_1 = arith.constant 0 : i32
    %c0_i32_2 = arith.constant 0 : i32
    return %arg0, %c0_i32, %c0_i32_0, %c0_i32_1 : i32, i32, i32, i32
  }
  func.func @transform_4(%arg0: i32, %arg1: i32) -> (i32, i32) {
    %c0_i32 = arith.constant 0 : i32
    %c0_i32_0 = arith.constant 0 : i32
    %c0_i32_1 = arith.constant 0 : i32
    return %c0_i32, %c0_i32_0 : i32, i32
  }
  func.func @transform_5(%arg0: i32, %arg1: i32) -> (i32, i32) {
    %c0_i32 = arith.constant 0 : i32
    %c0_i32_0 = arith.constant 0 : i32
    %c0_i32_1 = arith.constant 0 : i32
    return %c0_i32, %c0_i32_0 : i32, i32
  }
  func.func @transform_6(%arg0: i32, %arg1: i32) -> (i32, i32) {
    %c0_i32 = arith.constant 0 : i32
    %c0_i32_0 = arith.constant 0 : i32
    %c0_i32_1 = arith.constant 0 : i32
    return %c0_i32, %c0_i32_0 : i32, i32
  }
  func.func @transform_7(%arg0: i32, %arg1: i32) -> (i32, i32, i32) {
    %c0_i32 = arith.constant 0 : i32
    %c0_i32_0 = arith.constant 0 : i32
    return %arg0, %arg1, %c0_i32 : i32, i32, i32
  }
}

module attributes {stable_mosaic.version = 11 : i64} {
  func.func @_linear_kernel(%arg0: i32, %arg1: memref<16x64xf32, #tpu.memory_space<vmem>>, %arg2: memref<64x32xf32, #tpu.memory_space<vmem>>, %arg3: memref<1x32xf32, #tpu.memory_space<vmem>>, %arg4: memref<16x32xf32, #tpu.memory_space<vmem>>) attributes {dimension_semantics = [#tpu.dimension_semantics<parallel>], iteration_bounds = array<i64: 1>, scalar_prefetch = 0 : i64, scratch_operands = 0 : i64, tpu.core_type = #tpu.core_type<tc>, window_params = [{transform_indices = @transform_0, window_bounds = array<i64: 16, 64>}, {pipeline_mode = #tpu.pipeline_mode<synchronous>, transform_indices = @transform_1, window_bounds = array<i64: 64, 32>}, {pipeline_mode = #tpu.pipeline_mode<synchronous>, transform_indices = @transform_2, window_bounds = array<i64: 1, 32>}, {transform_indices = @transform_3, window_bounds = array<i64: 16, 32>}]} {
    %c0 = arith.constant 0 : index
    %c0_0 = arith.constant 0 : index
    %0 = vector.load %arg1[%c0, %c0_0] : memref<16x64xf32, #tpu.memory_space<vmem>>, vector<16x64xf32>
    %c0_1 = arith.constant 0 : index
    %c0_2 = arith.constant 0 : index
    %1 = vector.load %arg2[%c0_1, %c0_2] : memref<64x32xf32, #tpu.memory_space<vmem>>, vector<64x32xf32>
    %cst = arith.constant dense<0.000000e+00> : vector<16x32xf32>
    %2 = tpu.matmul %0, %1, %cst {dimension_numbers = #tpu.dot_dimension_numbers<[1], [0], [0], [1], [0, 0, 1, 1], [], []>} : vector<16x64xf32>, vector<64x32xf32>, vector<16x32xf32> -> vector<16x32xf32>
    %c0_3 = arith.constant 0 : index
    %c0_4 = arith.constant 0 : index
    %3 = vector.load %arg3[%c0_3, %c0_4] : memref<1x32xf32, #tpu.memory_space<vmem>>, vector<1x32xf32>
    %4 = vector.broadcast %3 : vector<1x32xf32> to vector<16x32xf32>
    %5 = arith.addf %2, %4 : vector<16x32xf32>
    %c0_5 = arith.constant 0 : index
    %c0_6 = arith.constant 0 : index
    %6 = vector.load %arg4[%c0_5, %c0_6] : memref<16x32xf32, #tpu.memory_space<vmem>>, vector<16x32xf32>
    tpu.vector_store %arg4[%c0_5, %c0_6], %5 {strides = array<i32>} : memref<16x32xf32, #tpu.memory_space<vmem>>, vector<16x32xf32>,
    return
  }
  func.func @transform_0(%arg0: i32) -> (i32, i32) {
    %c0_i32 = arith.constant 0 : i32
    %c0_i32_0 = arith.constant 0 : i32
    return %arg0, %c0_i32 : i32, i32
  }
  func.func @transform_1(%arg0: i32) -> (i32, i32) {
    %c0_i32 = arith.constant 0 : i32
    %c0_i32_0 = arith.constant 0 : i32
    %c0_i32_1 = arith.constant 0 : i32
    return %c0_i32, %c0_i32_0 : i32, i32
  }
  func.func @transform_2(%arg0: i32) -> (i32, i32) {
    %c0_i32 = arith.constant 0 : i32
    %c0_i32_0 = arith.constant 0 : i32
    %c0_i32_1 = arith.constant 0 : i32
    return %c0_i32, %c0_i32_0 : i32, i32
  }
  func.func @transform_3(%arg0: i32) -> (i32, i32) {
    %c0_i32 = arith.constant 0 : i32
    %c0_i32_0 = arith.constant 0 : i32
    return %arg0, %c0_i32 : i32, i32
  }
}

</mosaic_0001>

<bundles_post_ra>
// kernel: squeeze.15
= control target key start
LH: loop header
LB: loop body
LE: loop exit
PB: predicated region body
PF: predicated region fallthrough
CT: control target
= control target key end

     0   :  { %vm3_vm0 = vcmask 130048   ;;  %s239_s0 = inlined_call_operand.vmem [shape: f32[1,16,32], index: 0, kind: input, shape index: {}]   ;;  %s240_s1 = inlined_call_operand.vmem [shape: f32[2,8,2,16], index: 1, kind: output, shape index: {}]  }
   0x1   :  { %v13_v0 = vld [vmem:[%s239_s0] sm:$0xff]   ;;  %v157_v1 = vld [vmem:[%s239_s0 + $0x8] sm:$0xff]   ;;  %s174_s0 = smov 112  }
   0x2   :  { %14 = vrot.lane.b32.xlu0 %v13_v0, %s174_s0  ;;  %4 = vst.msk [vmem:[#allocation0] ss:$8 sm:$0xf] %vm3_vm0, %v13_v0   ;;  %5 = vst.msk [vmem:[#allocation0] ss:$8 sm:$0xf0] %vm3_vm0, %v13_v0  }
   0x3   :  { %10 = vst.msk [vmem:[#allocation0 + $0x40] ss:$8 sm:$0xf] %vm3_vm0, %v157_v1   ;;  %12 = vst.msk [vmem:[#allocation0 + $0x40] ss:$8 sm:$0xf0] %vm3_vm0, %v157_v1  }
   0x6   :  { %23 = vrot.lane.b32.xlu0 %v157_v1, %s174_s0 }
  0x74   :  { %v15_v2 = vpop.permute.xlu0 %14  }
  0x75   :  { %18 = vst.msk [vmem:[#allocation0 + $0x1] ss:$8 sm:$0xf] %vm3_vm0, %v15_v2   ;;  %20 = vst.msk [vmem:[#allocation0 + $0x1] ss:$8 sm:$0xf0] %vm3_vm0, %v15_v2  }
  0x78   :  { %v24_v3 = vpop.permute.xlu0 %23  }
  0x79   :  { %27 = vst.msk [vmem:[#allocation0 + $0x41] ss:$8 sm:$0xf] %vm3_vm0, %v24_v3   ;;  %29 = vst.msk [vmem:[#allocation0 + $0x41] ss:$8 sm:$0xf0] %vm3_vm0, %v24_v3  }
  0x7c   :  { %v34_v4 = vld [vmem:[#allocation0] sm:$0x3]  ;;  %v39_v5 = vld [vmem:[#allocation0 + $0x8] sm:$0x3]  ;;  %v45_v6 = vld [vmem:[#allocation0 + $0x10] sm:$0x3] }
  0x7d   :  { %37 = vst [vmem:[%s240_s1] sm:$0x3] %v34_v4  ;;  %158 = vst [vmem:[%s240_s1 + $0x2] sm:$0x3] %v39_v5  ;;  %v52_v7 = vld [vmem:[#allocation0 + $0x18] sm:$0x3] }
  0x7e   :  { %159 = vst [vmem:[%s240_s1 + $0x4] sm:$0x3] %v45_v6  ;;  %v59_v8 = vld [vmem:[#allocation0 + $0x20] sm:$0x3]  ;;  %v66_v9 = vld [vmem:[#allocation0 + $0x28] sm:$0x3] }
  0x7f   :  { %160 = vst [vmem:[%s240_s1 + $0x6] sm:$0x3] %v52_v7  ;;  %161 = vst [vmem:[%s240_s1 + $0x8] sm:$0x3] %v59_v8  ;;  %v73_v10 = vld [vmem:[#allocation0 + $0x30] sm:$0x3] }
  0x80   :  { %162 = vst [vmem:[%s240_s1 + $0xa] sm:$0x3] %v66_v9  ;;  %v80_v11 = vld [vmem:[#allocation0 + $0x38] sm:$0x3]  ;;  %163 = vst [vmem:[%s240_s1 + $0xc] sm:$0x3] %v73_v10 }
  0x81   :  { %164 = vst [vmem:[%s240_s1 + $0xe] sm:$0x3] %v80_v11  ;;  %v87_v12 = vld [vmem:[#allocation0 + $0x40] sm:$0x3]  ;;  %v94_v13 = vld [vmem:[#allocation0 + $0x48] sm:$0x3] }
  0x82   :  { %v101_v14 = vld [vmem:[#allocation0 + $0x50] sm:$0x3]  ;;  %165 = vst [vmem:[%s240_s1 + $0x10] sm:$0x3] %v87_v12  ;;  %166 = vst [vmem:[%s240_s1 + $0x12] sm:$0x3] %v94_v13 }
  0x83   :  { %167 = vst [vmem:[%s240_s1 + $0x14] sm:$0x3] %v101_v14  ;;  %v108_v15 = vld [vmem:[#allocation0 + $0x58] sm:$0x3]  ;;  %v115_v16 = vld [vmem:[#allocation0 + $0x60] sm:$0x3] }
  0x84   :  { %v122_v17 = vld [vmem:[#allocation0 + $0x68] sm:$0x3]  ;;  %168 = vst [vmem:[%s240_s1 + $0x16] sm:$0x3] %v108_v15  ;;  %169 = vst [vmem:[%s240_s1 + $0x18] sm:$0x3] %v115_v16 }
  0x85   :  { %170 = vst [vmem:[%s240_s1 + $0x1a] sm:$0x3] %v122_v17  ;;  %v129_v18 = vld [vmem:[#allocation0 + $0x70] sm:$0x3]  ;;  %v136_v19 = vld [vmem:[#allocation0 + $0x78] sm:$0x3] }
  0x86   :  { %171 = vst [vmem:[%s240_s1 + $0x1c] sm:$0x3] %v129_v18  ;;  %172 = vst [vmem:[%s240_s1 + $0x1e] sm:$0x3] %v136_v19 }

// kernel: fast_attention_forward.4
= control target key start
LH: loop header
LB: loop body
LE: loop exit
PB: predicated region body
PF: predicated region fallthrough
CT: control target
= control target key end

     0   :  { %s553_s12 = smov 0   ;;  %s555_s13 = smov 0   ;;  %s596_s0 = inlined_call_operand.vmem [shape: f32[3,16,32], index: 0, kind: input, shape index: {}]   ;;  %s597_s1 = inlined_call_operand.vmem [shape: f32[3,32,32], index: 1, kind: input, shape index: {}]   ;;  %s598_s2 = inlined_call_operand.vmem [shape: f32[3,1,32], index: 2, kind: input, shape index: {}]   ;;  %s599_s3 = inlined_call_operand.vmem [shape: f32[3,16,32], index: 3, kind: output, shape index: {}]  }
   0x1   :  { %s557_s14 = smov 0  }
   0x2 LB: > { %s25_s15 = sadd.s32 1, %s527_s13  ;;  %p453_p0 = scmp.ge.s32.totalorder %s531_s14, 1  ;;  %s531_s14 = sphi %s557_s14, %s13_s14   ;;  %s527_s13 = sphi %s555_s13, %s601_s13   ;;  %s523_s12 = sphi %s553_s12, %s600_s12  }
   0x3   : > { %p27_p1 = scmp.ge.s32.totalorder %s25_s15, 3  ;;  %p176_p2 = scmp.lt.s32.totalorder %s531_s14, 4 }
   0x5   : > { %s603_s15 = smov (%p27_p1, %s25_s15), 0  ;;  %p177_p3 = pnand %p453_p0, %p176_p2 }
   0x6   : > { %p217_p4 = scmp.lt.s32.totalorder (!%p177_p3), %s523_s12, 2 }
   0x7   : > { %180 = sbr.rel (%p177_p3) target bundleno = 222 (0xde), region = 32 }
   0xc   : > { %s605_s12 = smov (!%p217_p4, %s523_s12), 2  ;;  %vm257_vm0 = vcmask 261120  }
   0xd   : > { %s466_s16 = sshll.u32 %s605_s12, 5  ;;  %s465_s17 = sshll.u32 %s605_s12, 4 }
   0xe   : > { %s230_s20 = scalar_lea.vmem %s597_s1, %s466_s16  ;;  %s224_s23 = scalar_lea.vmem %s596_s0, %s465_s17 }
   0xf   : > { %v249_v0 = vld [vmem:[%s230_s20 + $0x18] sm:$0xff]  ;;  %v248_v1 = vld [vmem:[%s230_s20 + $0x10] sm:$0xff]  ;;  %v244_v2 = vld [vmem:[%s224_s23] sm:$0xff]  ;;  %s233_s26 = scalar_lea.vmem %s598_s2, %s605_s12  ;;  %s242_s29 = scalar_lea.vmem %s599_s3, %s465_s17 }
  0x10   : > { %474 = vmatprep.subr.mxu0 %v249_v0  ;;  %v247_v3 = vld [vmem:[%s230_s20 + $0x8] sm:$0xff]  ;;  %482 = vmatprep.mubr.msk.f32.mxu0 %vm257_vm0, %v244_v2  ;;  %v246_v4 = vld [vmem:[%s230_s20] sm:$0xff] }
  0x11   : > { %475 = vmatpush3.msra.mxu0 %v249_v0  ;;  %v245_v5 = vld [vmem:[%s224_s23 + $0x8] sm:$0xff]  ;;  %v460_v6 = vld [vmem:[%s233_s26] ss:$0 sm:$0xff] }
  0x12   : > { %476 = vmatprep.subr.mxu0 %v248_v1 }
  0x13   : > { %477 = vmatpush3.msra.mxu0 %v248_v1 }
  0x14   : > { %478 = vmatprep.subr.mxu0 %v247_v3 }
  0x15   : > { %479 = vmatpush3.msra.mxu0 %v247_v3 }
  0x16   : > { %480 = vmatprep.subr.mxu0 %v246_v4 }
  0x17   : > { %481 = vmatpush3.msra.mxu0 %v246_v4 }
  0x18   : > { %483 = vmatmul.mubr.msk.f32.vlgmr.msra.gmra.mxu0 %vm257_vm0, %v245_v5 }
  0xd8   : > { %v484_v7 = vpop.f32.mrf.mxu0 }
  0xd9   : > { %v336_v8 = vadd.f32 %v484_v7, %v460_v6 }
  0xda   : > { %v330_v9 = vpop.f32.mrf.mxu0 }
  0xdb   : > { %340 = vst.msk [vmem:[%s242_s29 + $0x8] sm:$0xff] %vm257_vm0, %v336_v8  ;;  %v331_v10 = vadd.f32 %v460_v6, %v330_v9 }
  0xdd   : > { %339 = vst.msk [vmem:[%s242_s29] sm:$0xff] %vm257_vm0, %v331_v10 }
  0xde PF: > { %s13_s14 = sadd.s32 1, %s531_s14   ;;  %s600_s12 = smov %s527_s13 }
  0xdf   : > { %p10_p5 = scmp.ge.s32.totalorder %s13_s14, 5   ;;  %s601_s13 = smov %s603_s15 }
  0xe1   :  { %12 = sbr.rel (!%p10_p5) target bundleno = 2 (0x2), region = 68 }

// kernel: fast_attention_forward.5
= control target key start
LH: loop header
LB: loop body
LE: loop exit
PB: predicated region body
PF: predicated region fallthrough
CT: control target
= control target key end

     0   :  { %vm27_vm0 = vcmask 261120   ;;  %v374_v29 = vmov 683565275   ;;  %v375_v32 = vmov 2475754826   ;;  %s513_s1 = inlined_call_operand.vmem [shape: f32[32,64], index: 1, kind: input, shape index: {}]   ;;  %s514_s0 = inlined_call_operand.vmem [shape: f32[16,32], index: 0, kind: input, shape index: {}]   ;;  %s515_s2 = inlined_call_operand.vmem [shape: f32[1,64], index: 2, kind: input, shape index: {}]   ;;  %s516_s3 = inlined_call_operand.vmem [shape: f32[16,64], index: 3, kind: output, shape index: {}]  }
   0x1   :  { %v19_v0 = vld [vmem:[%s513_s1 + $0x18] sm:$0xff]  ;;  %v18_v1 = vld [vmem:[%s513_s1 + $0x10] sm:$0xff]  ;;  %v14_v2 = vld [vmem:[%s514_s0] sm:$0xff]  ;;  %v376_v34 = vmov 2131351028  }
   0x2   :  { %341 = vmatprep.subr.mxu0 %v19_v0  ;;  %v17_v3 = vld [vmem:[%s513_s1 + $0x8] sm:$0xff]  ;;  %349 = vmatprep.mubr.msk.f32.mxu0 %vm27_vm0, %v14_v2  ;;  %v16_v4 = vld [vmem:[%s513_s1] sm:$0xff]  ;;  %v377_v36 = vmov 2102212464   ;;  %v378_v38 = vmov 920167782  }
   0x3   :  { %342 = vmatpush3.msra.mxu0 %v19_v0  ;;  %v15_v5 = vld [vmem:[%s514_s0 + $0x8] sm:$0xff]  ;;  %v324_v6 = vld [vmem:[%s515_s2] ss:$0 sm:$0xff]  ;;  %v379_v45 = vmov 1326507024  }
   0x4   :  { %343 = vmatprep.subr.mxu0 %v18_v1 }
   0x5   :  { %344 = vmatpush3.msra.mxu0 %v18_v1 }
   0x6   :  { %345 = vmatprep.subr.mxu0 %v17_v3 }
   0x7   :  { %346 = vmatpush3.msra.mxu0 %v17_v3 }
   0x8   :  { %347 = vmatprep.subr.mxu0 %v16_v4 }
   0x9   :  { %348 = vmatpush3.msra.mxu0 %v16_v4 }
   0xa   :  { %350 = vmatmul.mubr.msk.f32.vlgmr.msra.gmra.mxu0 %vm27_vm0, %v15_v5 }
  0xca   :  { %v351_v7 = vpop.f32.mrf.mxu0 }
  0xcb   :  { %v423_v8 = vadd.f32 %v351_v7, %v324_v6 }
  0xcc   :  { %v100_v9 = vpop.f32.mrf.mxu0 }
  0xcd   :  { %v212_v10 = vand.u32 2147483647, %v423_v8  ;;  %v215_v11 = vand.u32 2139095040, %v423_v8  ;;  %v427_v12 = vadd.f32 %v324_v6, %v100_v9  ;;  %vm214_vm15 = vcmp.lt.s32.totalorder %v423_v8, 0 }
  0xcf   :  { %v216_v13 = vshrl.u32 %v215_v11, 23  ;;  %v219_v14 = vand.u32 8388607, %v212_v10  ;;  %v112_v15 = vand.u32 2139095040, %v427_v12  ;;  %v109_v17 = vand.u32 2147483647, %v427_v12 }
  0xd0   :  { %vm480_vm0 = vcmp.le.f32.partialorder %v212_v10, 0.7853982 }
  0xd1   :  { %v331_v16 = vadd.s32 4294967169, %v216_v13  ;;  %v113_v18 = vshrl.u32 %v112_v15, 23  ;;  %v220_v20 = vor.u32 8388608, %v219_v14  ;;  %v116_v22 = vand.u32 8388607, %v109_v17 }
  0xd3   :  { %v222_v19 = vadd.s32 1, %v331_v16  ;;  %v327_v21 = vadd.s32 4294967169, %v113_v18  ;;  %v435_v27 = vshll.u32 %v220_v20, 8  ;;  %v117_v31 = vor.u32 8388608, %v116_v22 }
  0xd5   :  { %vm223_vm1 = vcmp.gt.s32.totalorder %v222_v19, 0  ;;  %v119_v24 = vadd.s32 1, %v327_v21  ;;  %v157_v0 = vshll.u32 %v117_v31, 8 }
  0xd6   :  { %v224_v23 = vsel %vm223_vm1, %v222_v19, 0  ;;  %vm111_vm1 = vcmp.lt.s32.totalorder %v427_v12, 0 }
  0xd7   :  { %v225_v25 = vshrl.u32 %v224_v23, 5  ;;  %v226_v26 = vand.u32 31, %v224_v23  ;;  %vm120_vm2 = vcmp.gt.s32.totalorder %v119_v24, 0 }
  0xd8   :  { %v121_v50 = vsel %vm120_vm2, %v119_v24, 0  ;;  %vm492_vm2 = vcmp.le.f32.partialorder %v109_v17, 0.7853982 }
  0xd9   :  { %v227_v28 = vsub.s32 32, %v226_v26  ;;  %v229_v30 = vshll.u32 %v374_v29, %v226_v26  ;;  %v232_v33 = vshll.u32 %v375_v32, %v226_v26  ;;  %v235_v35 = vshll.u32 %v376_v34, %v226_v26 }
  0xda   :  { %v238_v37 = vshll.u32 %v377_v36, %v226_v26  ;;  %v241_v39 = vshll.u32 %v378_v38, %v226_v26  ;;  %vm244_vm3 = vcmp.lt.s32.totalorder %v225_v25, 1  ;;  %vm246_vm4 = vcmp.lt.s32.totalorder %v225_v25, 3 }
  0xdb   :  { %v230_v40 = vshrl.u32 %v375_v32, %v227_v28  ;;  %v233_v41 = vshrl.u32 %v376_v34, %v227_v28  ;;  %v236_v42 = vshrl.u32 %v377_v36, %v227_v28  ;;  %v228_v43 = vshrl.u32 %v374_v29, %v227_v28 }
  0xdc   :  { %v239_v44 = vshrl.u32 %v378_v38, %v227_v28  ;;  %v242_v46 = vshrl.u32 %v379_v45, %v227_v28  ;;  %vm247_vm5 = vcmp.lt.s32.totalorder %v225_v25, 4  ;;  %v123_v53 = vand.u32 31, %v121_v50 }
  0xdd   :  { %v231_v47 = vor.u32 %v230_v40, %v229_v30  ;;  %v234_v48 = vor.u32 %v233_v41, %v232_v33  ;;  %v237_v49 = vor.u32 %v236_v42, %v235_v35  ;;  %vm245_vm6 = vcmp.lt.s32.totalorder %v225_v25, 2 }
  0xde   :  { %v240_v51 = vor.u32 %v239_v44, %v238_v37  ;;  %v243_v52 = vor.u32 %v242_v46, %v241_v39  ;;  %v124_v61 = vsub.s32 32, %v123_v53  ;;  %v122_v4 = vshrl.u32 %v121_v50, 5 }
  0xdf   :  { %v248_v54 = vsel %vm244_vm3, %v228_v43, %v231_v47  ;;  %v249_v55 = vsel %vm247_vm5, %v237_v49, 2102212464  ;;  %v252_v56 = vsel %vm244_vm3, %v231_v47, %v234_v48  ;;  %v256_v57 = vsel %vm244_vm3, %v234_v48, %v237_v49 }
  0xe0   :  { %v250_v58 = vsel %vm246_vm4, %v234_v48, %v249_v55  ;;  %v253_v59 = vsel %vm247_vm5, %v240_v51, 920167782  ;;  %v257_v60 = vsel %vm247_vm5, %v243_v52, 1326507024  ;;  %v126_v11 = vshll.u32 %v374_v29, %v123_v53 }
  0xe1   :  { %v254_v62 = vsel %vm246_vm4, %v237_v49, %v253_v59  ;;  %v258_v63 = vsel %vm246_vm4, %v240_v51, %v257_v60  ;;  %v251_v1 = vsel %vm245_vm6, %v248_v54, %v250_v58  ;;  %v127_v13 = vshrl.u32 %v375_v32, %v124_v61 }
  0xe2   :  { %v255_v2 = vsel %vm245_vm6, %v252_v56, %v254_v62  ;;  %v259_v3 = vsel %vm245_vm6, %v256_v57, %v258_v63  ;;  %v129_v14 = vshll.u32 %v375_v32, %v123_v53  ;;  %v130_v15 = vshrl.u32 %v376_v34, %v124_v61 }
  0xe3   :  { %v447_v5 = vmul.u32.u64.low %v435_v27, %v259_v3  ;;  %v448_v6 = vmul.u32.u64.high %v435_v27, %v259_v3, %v447_v5  ;;  %v451_v7 = vmul.u32.u64.low %v435_v27, %v255_v2  ;;  %v452_v9 = vmul.u32.u64.high %v435_v27, %v255_v2, %v451_v7 }
  0xe4   :  { %v132_v16 = vshll.u32 %v376_v34, %v123_v53  ;;  %v133_v18 = vshrl.u32 %v377_v36, %v124_v61  ;;  %v135_v19 = vshll.u32 %v377_v36, %v123_v53  ;;  %v136_v20 = vshrl.u32 %v378_v38, %v124_v61 }
  0xe5   :  { %v128_v21 = vor.u32 %v127_v13, %v126_v11  ;;  %v131_v22 = vor.u32 %v130_v15, %v129_v14  ;;  %v138_v23 = vshll.u32 %v378_v38, %v123_v53  ;;  %v139_v24 = vshrl.u32 %v379_v45, %v124_v61 }
  0xe6   :  { %v267_v25 = vmul.u32 %v435_v27, %v251_v1  ;;  %vm269_vm7 = vc.u32 %v448_v6, %v451_v7  ;;  %v270_v26 = vadd.s32 1, %v452_v9  ;;  %v134_v28 = vor.u32 %v133_v18, %v132_v16 }
  0xe7   :  { %v125_v30 = vshrl.u32 %v374_v29, %v124_v61  ;;  %v137_v31 = vor.u32 %v136_v20, %v135_v19  ;;  %v140_v32 = vor.u32 %v139_v24, %v138_v23  ;;  %vm141_vm8 = vcmp.lt.s32.totalorder %v122_v4, 1 }
  0xe8   :  { %v271_v33 = vsel %vm269_vm7, %v270_v26, %v452_v9  ;;  %vm143_vm9 = vcmp.lt.s32.totalorder %v122_v4, 3  ;;  %vm144_vm10 = vcmp.lt.s32.totalorder %v122_v4, 4  ;;  %v149_v34 = vsel %vm141_vm8, %v128_v21, %v131_v22 }
  0xe9   :  { %v272_v35 = vadd.s32 %v271_v33, %v267_v25  ;;  %v146_v36 = vsel %vm144_vm10, %v134_v28, 2102212464  ;;  %v150_v37 = vsel %vm144_vm10, %v137_v31, 920167782  ;;  %v153_v27 = vsel %vm141_vm8, %v131_v22, %v134_v28 }
  0xea   :  { %vm142_vm11 = vcmp.lt.s32.totalorder %v122_v4, 2  ;;  %v145_v38 = vsel %vm141_vm8, %v125_v30, %v128_v21  ;;  %v151_v39 = vsel %vm143_vm9, %v134_v28, %v150_v37  ;;  %v154_v40 = vsel %vm144_vm10, %v140_v32, 1326507024 }
  0xeb   :  { %v273_v41 = vadd.s32 536870912, %v272_v35  ;;  %v147_v42 = vsel %vm143_vm9, %v131_v22, %v146_v36  ;;  %v152_v43 = vsel %vm142_vm11, %v149_v34, %v151_v39  ;;  %v155_v29 = vsel %vm143_vm9, %v137_v31, %v154_v40 }
  0xec   :  { %v156_v44 = vsel %vm142_vm11, %v153_v27, %v155_v29  ;;  %v462_v45 = vmul.u32.u64.low %v157_v0, %v152_v43  ;;  %v463_v46 = vmul.u32.u64.high %v157_v0, %v152_v43, %v462_v45  ;;  %v148_v50 = vsel %vm142_vm11, %v145_v38, %v147_v42 }
  0xed   :  { %v274_v47 = vshrl.u32 %v273_v41, 30  ;;  %v465_v48 = vmul.u32.u64.low %v157_v0, %v156_v44  ;;  %v466_v49 = vmul.u32.u64.high %v157_v0, %v156_v44, %v465_v48  ;;  %v164_v54 = vmul.u32 %v157_v0, %v148_v50 }
  0xee   :  { %v167_v52 = vadd.s32 1, %v463_v46  ;;  %v268_v0 = vadd.s32 %v451_v7, %v448_v6  ;;  %vm304_vm6 = vweird.f32 %v423_v8  ;;  %vm317_vm7 = vcmask 523264  }
  0xef   :  { %v275_v51 = vshll.u32 %v274_v47, 30  ;;  %vm166_vm12 = vc.u32 %v466_v49, %v462_v45  ;;  %v165_v25 = vadd.s32 %v462_v45, %v466_v49  ;;  %v298_v37 = vsub.s32 4, %v274_v47 }
  0xf0   :  { %v168_v55 = vsel %vm166_vm12, %v167_v52, %v463_v46  ;;  %vm201_vm11 = vweird.f32 %v427_v12 }
  0xf1   :  { %v276_v53 = vsub.s32 %v272_v35, %v275_v51  ;;  %v169_v57 = vadd.s32 %v168_v55, %v164_v54  ;;  %v299_v40 = vsel %vm214_vm15, %v298_v37, %v274_v47 }
  0xf2   :  { %v301_v10 = vsel %vm480_vm0, 0, %v299_v40 }
  0xf3   :  { %v278_v56 = vsub.s32 0, %v276_v53  ;;  %v170_v59 = vadd.s32 536870912, %v169_v57  ;;  %v305_v45 = vand.u32 3, %v301_v10 }
  0xf5   :  { %v332_v58 = vmin.u32 %v278_v56, %v276_v53  ;;  %v471_v61 = vshrl.u32 %v170_v59, 30  ;;  %vm310_vm3 = vcmp.eq.s32.totalorder %v305_v45, 2  ;;  %vm307_vm4 = vcmp.eq.s32.totalorder %v305_v45, 0 }
  0xf6   :  { %vm306_vm5 = vcmp.lt.s32.totalorder %v305_v45, 2 }
  0xf7   :  { %v280_v60 = vclz %v332_v58  ;;  %v172_v63 = vshll.u32 %v471_v61, 30  ;;  %v195_v46 = vsub.s32 4, %v471_v61 }
  0xf9   :  { %v333_v62 = vadd.s32 4294967294, %v280_v60  ;;  %v173_v2 = vsub.s32 %v169_v57, %v172_v63  ;;  %v196_v51 = vsel %vm111_vm1, %v195_v46, %v471_v61 }
  0xfa   :  { %v198_v55 = vsel %vm492_vm2, 0, %v196_v51 }
  0xfb   :  { %vm334_vm13 = vcmp.lt.s32.totalorder %v333_v62, 0  ;;  %v175_v5 = vsub.s32 0, %v173_v2  ;;  %v202_v57 = vand.u32 3, %v198_v55 }
  0xfc   :  { %v283_v1 = vsel %vm334_vm13, 0, %v333_v62 }
  0xfd   :  { %v284_v3 = vsub.s32 32, %v283_v1  ;;  %v288_v4 = vsub.s32 4294967266, %v283_v1  ;;  %v285_v9 = vshll.u32 %v276_v53, %v283_v1  ;;  %v328_v14 = vmin.u32 %v175_v5, %v173_v2 }
  0xfe   :  { %vm207_vm8 = vcmp.eq.s32.totalorder %v202_v57, 2  ;;  %vm204_vm9 = vcmp.eq.s32.totalorder %v202_v57, 0  ;;  %vm203_vm10 = vcmp.lt.s32.totalorder %v202_v57, 2 }
  0xff   :  { %v286_v11 = vshrl.u32 %v268_v0, %v284_v3  ;;  %v289_v13 = vadd.s32 127, %v288_v4  ;;  %v177_v18 = vclz %v328_v14 }
 0x101   :  { %v287_v15 = vor.u32 %v286_v11, %v285_v9  ;;  %v290_v16 = vshll.u32 %v289_v13, 23  ;;  %v329_v20 = vadd.s32 4294967294, %v177_v18 }
 0x103   :  { %v291_v19 = vor.u32 4788187, %v290_v16  ;;  %v294_v22 = vcvt.s32.f32 %v287_v15  ;;  %vm330_vm14 = vcmp.lt.s32.totalorder %v329_v20, 0 }
 0x104   :  { %v180_v24 = vsel %vm330_vm14, 0, %v329_v20 }
 0x105   :  { %v292_v21 = vand.u32 2147483647, %v291_v19  ;;  %v181_v6 = vsub.s32 32, %v180_v24  ;;  %v185_v7 = vsub.s32 4294967266, %v180_v24  ;;  %v182_v28 = vshll.u32 %v173_v2, %v180_v24 }
 0x107   :  { %v295_v23 = vmul.f32 %v294_v22, %v292_v21  ;;  %v183_v30 = vshrl.u32 %v165_v25, %v181_v6  ;;  %v186_v31 = vadd.s32 127, %v185_v7 }
 0x109   :  { %v296_v26 = vxor.u32 2147483648, %v295_v23  ;;  %v184_v35 = vor.u32 %v183_v30, %v182_v28  ;;  %v187_v36 = vshll.u32 %v186_v31, 23 }
 0x10b   :  { %v297_v33 = vsel %vm214_vm15, %v296_v26, %v295_v23  ;;  %v188_v27 = vor.u32 4788187, %v187_v36  ;;  %v191_v39 = vcvt.s32.f32 %v184_v35 }
 0x10c   :  { %v300_v34 = vsel %vm480_vm0, %v423_v8, %v297_v33 }
 0x10d   :  { %366 = vcosq.f32 %v300_v34  ;;  %v189_v38 = vand.u32 2147483647, %v188_v27 }
 0x10e   :  { %368 = vsinq.f32 %v300_v34 }
 0x10f   :  { %v192_v41 = vmul.f32 %v191_v39, %v189_v38 }
 0x111   :  { %v193_v42 = vxor.u32 2147483648, %v192_v41 }
 0x113   :  { %v194_v29 = vsel %vm111_vm1, %v193_v42, %v192_v41 }
 0x114   :  { %v197_v44 = vsel %vm492_vm2, %v427_v12, %v194_v29 }
 0x115   :  { %370 = vcosq.f32 %v197_v44 }
 0x116   :  { %372 = vsinq.f32 %v197_v44 }
 0x11a   :  { %v367_v47 = vpop.eup %366 }
 0x11b   :  { %v369_v48 = vpop.eup %368  ;;  %v311_v49 = vxor.u32 2147483648, %v367_v47 }
 0x11c   :  { %v308_v50 = vxor.u32 2147483648, %v369_v48 }
 0x11d   :  { %v312_v17 = vsel %vm310_vm3, %v311_v49, %v369_v48 }
 0x11e   :  { %v309_v52 = vsel %vm307_vm4, %v367_v47, %v308_v50 }
 0x11f   :  { %v313_v53 = vsel %vm306_vm5, %v309_v52, %v312_v17 }
 0x120   :  { %v314_v54 = vsel %vm304_vm6, nan, %v313_v53 }
 0x121   :  { %v316_v56 = vmul.f32 0.25, %v314_v54 }
 0x122   :  { %v371_v58 = vpop.eup %370 }
 0x123   :  { %319 = vst.msk [vmem:[%s516_s3 + $0x8] sm:$0xff] %vm317_vm7, %v316_v56  ;;  %v373_v59 = vpop.eup %372  ;;  %v208_v60 = vxor.u32 2147483648, %v371_v58 }
 0x124   :  { %v205_v61 = vxor.u32 2147483648, %v373_v59 }
 0x125   :  { %v209_v8 = vsel %vm207_vm8, %v208_v60, %v373_v59 }
 0x126   :  { %v206_v62 = vsel %vm204_vm9, %v371_v58, %v205_v61 }
 0x127   :  { %v210_v63 = vsel %vm203_vm10, %v206_v62, %v209_v8 }
 0x128   :  { %v211_v1 = vsel %vm201_vm11, nan, %v210_v63 }
 0x129   :  { %v315_v2 = vmul.f32 0.25, %v211_v1 }
 0x12b   :  { %318 = vst.msk [vmem:[%s516_s3] sm:$0xff] %vm317_vm7, %v315_v2 }

// kernel: fast_attention_forward.7
= control target key start
LH: loop header
LB: loop body
LE: loop exit
PB: predicated region body
PF: predicated region fallthrough
CT: control target
= control target key end

     0   :  { %vm32_vm0 = vcmask 523264   ;;  %s251_s0 = inlined_call_operand.vmem [shape: f32[16,64], index: 0, kind: input, shape index: {}]   ;;  %s252_s1 = inlined_call_operand.vmem [shape: f32[64,32], index: 1, kind: input, shape index: {}]   ;;  %s253_s2 = inlined_call_operand.vmem [shape: f32[1,32], index: 2, kind: input, shape index: {}]   ;;  %s254_s3 = inlined_call_operand.hbm [shape: f32[16,32], index: 3, kind: output, shape index: {}]  }
   0x1   :  { %v24_v0 = vld [vmem:[%s252_s1 + $0x38] sm:$0xff]  ;;  %v23_v1 = vld [vmem:[%s252_s1 + $0x30] sm:$0xff]  ;;  %v22_v2 = vld [vmem:[%s252_s1 + $0x28] sm:$0xff] }
   0x2   :  { %146 = vmatprep.subr.mxu0 %v24_v0  ;;  %v15_v3 = vld [vmem:[%s251_s0] sm:$0xff] }
   0x3   :  { %147 = vmatpush3.msra.mxu0 %v24_v0  ;;  %162 = vmatprep.mubr.msk.f32.mxu0 %vm32_vm0, %v15_v3 }
   0x4   :  { %148 = vmatprep.subr.mxu0 %v23_v1 }
   0x5   :  { %8 = vsyncpa [#allocation3], 0  ;;  %149 = vmatpush3.msra.mxu0 %v23_v1  ;;  %v21_v4 = vld [vmem:[%s252_s1 + $0x20] sm:$0xff]  ;;  %v20_v5 = vld [vmem:[%s252_s1 + $0x18] sm:$0xff]  ;;  %s190_s7 = smov [#allocation2]   ;;  %vm114_vm1 = vcmask 261120  }
   0x6   :  { %150 = vmatprep.subr.mxu0 %v22_v2  ;;  %v19_v6 = vld [vmem:[%s252_s1 + $0x10] sm:$0xff]  ;;  %v18_v7 = vld [vmem:[%s252_s1 + $0x8] sm:$0xff]  ;;  %v17_v8 = vld [vmem:[%s252_s1] sm:$0xff]  ;;  %s122_s8 = sshll.u32 %s190_s7, 4  ;;  %s123_s8 = int_to_ptr.vmem [resolvable:$true] %s122_s8 }
   0x7   :  { %151 = vmatpush3.msra.mxu0 %v22_v2  ;;  %v16_v9 = vld [vmem:[%s251_s0 + $0x8] sm:$0xff]  ;;  %v133_v10 = vld [vmem:[%s253_s2] ss:$0 sm:$0xff]  ;;  %s168_s1 = scalar_lea.vmem %s123_s8, 256  ;;  %p173_p1 = scmp.lt.s32.totalorder %s123_s8, %s123_s8 }
   0x8   :  { %152 = vmatprep.subr.mxu0 %v21_v4  ;;  %p169_p0 = scmp.ne.s32.totalorder %s123_s8, %s168_s1  ;;  %p174_p2 = scmp.lt.s32.totalorder %s168_s1, %s168_s1 }
   0x9   :  { %153 = vmatpush3.msra.mxu0 %v21_v4 }
   0xa   :  { %154 = vmatprep.subr.mxu0 %v20_v5  ;;  %p175_p3 = por %p174_p2, %p173_p1 }
   0xb   :  { %155 = vmatpush3.msra.mxu0 %v20_v5 }
   0xc   :  { %156 = vmatprep.subr.mxu0 %v19_v6  ;;  %p176_p4 = pnand %p175_p3, %p169_p0 }
   0xd   :  { %157 = vmatpush3.msra.mxu0 %v19_v6 }
   0xe   :  { %158 = vmatprep.subr.mxu0 %v18_v7 }
   0xf   :  { %159 = vmatpush3.msra.mxu0 %v18_v7 }
  0x10   :  { %160 = vmatprep.subr.mxu0 %v17_v8 }
  0x11   :  { %161 = vmatpush3.msra.mxu0 %v17_v8 }
  0x12   :  { %163 = vmatmul.mubr.msk.f32.vlgmr.msra.gmra.mxu0 %vm32_vm0, %v16_v9 }
  0xd2   :  { %v164_v11 = vpop.f32.mrf.mxu0 }
  0xd3   :  { %v111_v12 = vadd.f32 %v164_v11, %v133_v10 }
  0xd4   :  { %v105_v13 = vpop.f32.mrf.mxu0 }
  0xd5   :  { %116 = vst.msk [vmem:[#allocation2 + $0x8] sm:$0xff] %vm114_vm1, %v111_v12  ;;  %v106_v14 = vadd.f32 %v133_v10, %v105_v13 }
  0xd7   :  { %115 = vst.msk [vmem:[#allocation2] sm:$0xff] %vm114_vm1, %v106_v14 }
  0xd8   :  { %179 = shalt.err (!%p176_p4)
}
  0xd9   :  { %s191_s0 = smov 128   ;;  %s192_s9 = smov 8  }
  0xda   :  { %128 = dma.vmem_to_hbm [thread:$0]  %s123_s8, 256, %s254_s3, [#allocation3], %s191_s0, %s191_s0, %s192_s9  }
  0xdb   :  { %188 = dma.done.wait [#allocation3], 256  }
  0xdc   :  { %189 = vsyncadd [#allocation3], 4294967040 }
  0xdd   :  { %132 = vsyncpa [#allocation3], 1 }

// kernel: fast_attention_forward.6
= control target key start
LH: loop header
LB: loop body
LE: loop exit
PB: predicated region body
PF: predicated region fallthrough
CT: control target
= control target key end

     0   :  { %s1987_s24 = smov 0   ;;  %s1989_s25 = smov 0   ;;  %s2387_s0 = inlined_call_operand.vmem [shape: s32[2,2,8,8], index: 0, kind: input, shape index: {}]   ;;  %s2388_s1 = inlined_call_operand.vmem [shape: f32[2,8,32], index: 1, kind: input, shape index: {}]   ;;  %s2389_s2 = inlined_call_operand.vmem [shape: f32[2,2,8,32], index: 2, kind: input, shape index: {}]   ;;  %s2390_s3 = inlined_call_operand.vmem [shape: f32[2,2,8,16], index: 3, kind: input, shape index: {}]   ;;  %s2391_s4 = inlined_call_operand.vmem [shape: f32[32,64], index: 4, kind: input, shape index: {}]   ;;  %s2392_s5 = inlined_call_operand.vmem [shape: f32[1,64], index: 5, kind: input, shape index: {}]   ;;  %s2393_s6 = inlined_call_operand.vmem [shape: f32[32,64], index: 6, kind: input, shape index: {}]   ;;  %s2394_s7 = inlined_call_operand.vmem [shape: f32[2,8,64], index: 7, kind: output, shape index: {}]  }
   0x1   :  { %s1991_s26 = smov 0  }
   0x2 LB: > { %s29_s27 = sadd.s32 1, %s1931_s25  ;;  %p1717_p0 = scmp.ge.s32.totalorder %s1935_s26, 1  ;;  %s1935_s26 = sphi %s1991_s26, %s17_s26   ;;  %s1931_s25 = sphi %s1989_s25, %s2398_s25   ;;  %s1927_s24 = sphi %s1987_s24, %s2397_s24  }
   0x3   : > { %p31_p1 = scmp.ge.s32.totalorder %s29_s27, 2  ;;  %p290_p2 = scmp.lt.s32.totalorder %s1935_s26, 3 }
   0x5   : > { %s2400_s27 = smov (%p31_p1, %s29_s27), 0  ;;  %p291_p3 = pnand %p1717_p0, %p290_p2 }
   0x6   : > { %p344_p4 = scmp.lt.s32.totalorder (!%p291_p3), %s1927_s24, 1  ;;  %s1945_s30 = smov (!%p291_p3), 96  }
   0x7   : > { %294 = sbr.rel (%p291_p3) target bundleno = 1894 (0x766), region = 48 }
   0xc   : > { %v380_v0 = vld [vmem:[%s2391_s4 + $0x18] sm:$0xff]  ;;  %v1937_v1 = vmov 0.0   ;;  %v379_v2 = vld [vmem:[%s2391_s4 + $0x10] sm:$0xff]  ;;  %vm1938_vm0 = vmmov 0   ;;  %s2402_s24 = smov (!%p344_p4, %s1927_s24), 1  ;;  %v378_v3 = vld [vmem:[%s2391_s4 + $0x8] sm:$0xff]  ;;  %v645_v7 = vlaneseq }
   0xd   : > { %1765 = vmatprep.subr.mxu0 %v1937_v1  ;;  %1773 = vmatprep.mubr.msk.f32.mxu0 %vm1938_vm0, %v1937_v1  ;;  %s1720_s11 = sshll.u32 %s2402_s24, 3  ;;  %v377_v4 = vld [vmem:[%s2391_s4] sm:$0xff]  ;;  %vm2395_vm1 = vcmask 261120   ;;  %s2039_s17 = sshll.u32 %s2402_s24, 4  ;;  %v1939_v40 = vmov 683565275  }
   0xe   : > { %1766 = vmatpush3.msra.mxu0 %v380_v0  ;;  %1776 = vmatprep.subr.mxu1 %v1937_v1  ;;  %s358_s16 = scalar_lea.vmem %s2388_s1, %s1720_s11  ;;  %s2045_s20 = scalar_lea.vmem %s2389_s2, %s2039_s17  ;;  %v2057_v8 = vshrl.u32 %v645_v7, 7  ;;  %v1726_v26 = vld [vmem:[%s2392_s5] ss:$0 sm:$0xff]  ;;  %v1940_v42 = vmov 2475754826  }
   0xf   : > { %1767 = vmatprep.subr.mxu0 %v1937_v1  ;;  %1778 = vmatprep.mubr.msk.f32.mxu1 %vm1938_vm0, %v1937_v1  ;;  %v376_v5 = vld [vmem:[%s358_s16] sm:$0xff]  ;;  %s2054_s23 = scalar_lea.vmem %s2387_s0, %s2039_s17  ;;  %v1941_v45 = vmov 2131351028   ;;  %v1942_v48 = vmov 2102212464   ;;  %s2224_s10 = scalar_lea.vmem %s2390_s3, %s2039_s17 }
  0x10   : > { %1768 = vmatpush3.msra.mxu0 %v379_v2  ;;  %v566_v6 = vld [vmem:[%s2045_s20] sm:$0xff]  ;;  %v656_v10 = vsub.s32 1, %v2057_v8  ;;  %v649_v11 = vsub.s32 0, %v2057_v8  ;;  %v663_v12 = vsub.s32 2, %v2057_v8  ;;  %v670_v13 = vsub.s32 3, %v2057_v8 }
  0x11   : > { %1769 = vmatprep.subr.mxu0 %v1937_v1  ;;  %1777 = vmatpush3.xpose.msk.msra.mxu1 %vm2395_vm1, %v566_v6  ;;  %v568_v9 = vld [vmem:[%s2054_s23] sm:$0xff]  ;;  %v677_v18 = vsub.s32 4, %v2057_v8  ;;  %v684_v19 = vsub.s32 5, %v2057_v8  ;;  %v691_v22 = vsub.s32 6, %v2057_v8  ;;  %v698_v23 = vsub.s32 7, %v2057_v8 }
  0x12   : > { %1770 = vmatpush3.msra.mxu0 %v378_v3  ;;  %1781 = vmatprep.subr.mxu1 %v1937_v1  ;;  %v657_v14 = vrot.slane %v568_v9, %v656_v10  ;;  %v650_v15 = vrot.slane %v568_v9, %v649_v11  ;;  %v664_v16 = vrot.slane %v568_v9, %v663_v12  ;;  %v1943_v51 = vmov 920167782  }
  0x13   : > { %1771 = vmatprep.subr.mxu0 %v1937_v1  ;;  %v671_v17 = vrot.slane %v568_v9, %v670_v13  ;;  %v678_v20 = vrot.slane %v568_v9, %v677_v18  ;;  %v685_v21 = vrot.slane %v568_v9, %v684_v19  ;;  %v692_v24 = vrot.slane %v568_v9, %v691_v22 }
  0x14   : > { %1772 = vmatpush3.msra.mxu0 %v377_v4  ;;  %659 = vbcast.lane.b32.xlu0 %v657_v14, 256  ;;  %v699_v25 = vrot.slane %v568_v9, %v698_v23  ;;  %v1944_v54 = vmov 1326507024  }
  0x15   : > { %1774 = vmatmul.mubr.msk.f32.vlgmr.msra.gmra.mxu0 %vm2395_vm1, %v376_v5  ;;  %1796 = vmatprep.subr.mxu0 %v1937_v1 }
  0x16   : > { %1804 = vmatprep.mubr.msk.f32.mxu0 %vm1938_vm0, %v1937_v1  ;;  %652 = vbcast.lane.b32.xlu1 %v650_v15, 256 }
  0x18   : > { %666 = vbcast.lane.b32.xlu0 %v664_v16, 256 }
  0x1a   : > { %673 = vbcast.lane.b32.xlu1 %v671_v17, 256 }
  0x1c   : > { %680 = vbcast.lane.b32.xlu0 %v678_v20, 256 }
  0x1e   : > { %687 = vbcast.lane.b32.xlu1 %v685_v21, 256 }
  0x20   : > { %694 = vbcast.lane.b32.xlu0 %v692_v24, 256 }
  0x22   : > { %701 = vbcast.lane.b32.xlu1 %v699_v25, 256 }
  0xd5   : > { %v458_v27 = vpop.f32.mrf.mxu0 }
  0xd6   : > { %v2087_v28 = vadd.f32 %v1726_v26, %v458_v27 }
  0xd7   : > { %v1775_v29 = vpop.f32.mrf.mxu0 }
  0xd8   : > { %v465_v30 = vand.u32 2139095040, %v2087_v28  ;;  %v462_v34 = vand.u32 2147483647, %v2087_v28  ;;  %vm464_vm9 = vcmp.lt.s32.totalorder %v2087_v28, 0  ;;  %vm554_vm14 = vweird.f32 %v2087_v28 }
  0xda   : > { %v466_v31 = vshrl.u32 %v465_v30, 23  ;;  %v469_v37 = vand.u32 8388607, %v462_v34  ;;  %vm463_vm10 = vcmp.le.f32.partialorder %v462_v34, 0.7853982 }
  0xdc   : > { %v1728_v32 = vadd.s32 4294967169, %v466_v31  ;;  %v470_v56 = vor.u32 8388608, %v469_v37 }
  0xde   : > { %v472_v33 = vadd.s32 1, %v1728_v32  ;;  %v510_v9 = vshll.u32 %v470_v56, 8 }
  0xe0   : > { %vm473_vm2 = vcmp.gt.s32.totalorder %v472_v33, 0 }
  0xe1   : > { %v474_v35 = vsel %vm473_vm2, %v472_v33, 0 }
  0xe2   : > { %v476_v36 = vand.u32 31, %v474_v35  ;;  %v475_v39 = vshrl.u32 %v474_v35, 5 }
  0xe4   : > { %v477_v38 = vsub.s32 32, %v476_v36  ;;  %v479_v41 = vshll.u32 %v1939_v40, %v476_v36  ;;  %v482_v43 = vshll.u32 %v1940_v42, %v476_v36  ;;  %v485_v47 = vshll.u32 %v1941_v45, %v476_v36 }
  0xe5   : > { %v488_v50 = vshll.u32 %v1942_v48, %v476_v36  ;;  %v491_v53 = vshll.u32 %v1943_v51, %v476_v36  ;;  %vm494_vm3 = vcmp.lt.s32.totalorder %v475_v39, 1  ;;  %vm497_vm4 = vcmp.lt.s32.totalorder %v475_v39, 4 }
  0xe6   : > { %v480_v44 = vshrl.u32 %v1940_v42, %v477_v38  ;;  %v483_v46 = vshrl.u32 %v1941_v45, %v477_v38  ;;  %v486_v49 = vshrl.u32 %v1942_v48, %v477_v38  ;;  %v489_v52 = vshrl.u32 %v1943_v51, %v477_v38 }
  0xe7   : > { %v492_v55 = vshrl.u32 %v1944_v54, %v477_v38  ;;  %v478_v2 = vshrl.u32 %v1939_v40, %v477_v38  ;;  %vm496_vm5 = vcmp.lt.s32.totalorder %v475_v39, 3  ;;  %vm495_vm6 = vcmp.lt.s32.totalorder %v475_v39, 2 }
  0xe8   : > { %v481_v57 = vor.u32 %v480_v44, %v479_v41  ;;  %v484_v58 = vor.u32 %v483_v46, %v482_v43  ;;  %v487_v59 = vor.u32 %v486_v49, %v485_v47  ;;  %v490_v60 = vor.u32 %v489_v52, %v488_v50 }
  0xe9   : > { %v493_v61 = vor.u32 %v492_v55, %v491_v53 }
  0xea   : > { %v499_v62 = vsel %vm497_vm4, %v487_v59, 2102212464  ;;  %v502_v63 = vsel %vm494_vm3, %v481_v57, %v484_v58  ;;  %v506_v0 = vsel %vm494_vm3, %v484_v58, %v487_v59  ;;  %v503_v3 = vsel %vm497_vm4, %v490_v60, 920167782 }
  0xeb   : > { %v507_v4 = vsel %vm497_vm4, %v493_v61, 1326507024  ;;  %v504_v5 = vsel %vm496_vm5, %v487_v59, %v503_v3  ;;  %v498_v14 = vsel %vm494_vm3, %v478_v2, %v481_v57  ;;  %v500_v15 = vsel %vm496_vm5, %v484_v58, %v499_v62 }
  0xec   : > { %v508_v6 = vsel %vm496_vm5, %v490_v60, %v507_v4  ;;  %v505_v16 = vsel %vm495_vm6, %v502_v63, %v504_v5  ;;  %v501_v26 = vsel %vm495_vm6, %v498_v14, %v500_v15  ;;  %vm719_vm4 = vcmask 64512  }
  0xed   : > { %v509_v17 = vsel %vm495_vm6, %v506_v0, %v508_v6  ;;  %v2096_v24 = vmul.u32.u64.low %v510_v9, %v505_v16  ;;  %v2097_v25 = vmul.u32.u64.high %v510_v9, %v505_v16, %v2096_v24  ;;  %v517_v29 = vmul.u32 %v510_v9, %v501_v26  ;;  %v660_v6 = vpop.permute.xlu0 %659 }
  0xee   : > { %v2093_v20 = vmul.u32.u64.low %v510_v9, %v509_v17  ;;  %v2094_v21 = vmul.u32.u64.high %v510_v9, %v509_v17, %v2093_v20  ;;  %v653_v9 = vpop.permute.xlu1 %652 }
  0xef   : > { %v520_v27 = vadd.s32 1, %v2097_v25  ;;  %v2115_v20 = vand.u32 127, %v645_v7 }
  0xf0   : > { %vm519_vm7 = vc.u32 %v2094_v21, %v2096_v24  ;;  %v518_v42 = vadd.s32 %v2096_v24, %v2094_v21 }
  0xf1   : > { %v521_v30 = vsel %vm519_vm7, %v520_v27, %v2097_v25  ;;  %v667_v14 = vpop.permute.xlu0 %666  ;;  %vm704_vm15 = vcmp.eq.s32.totalorder %v660_v6, %v2115_v20  ;;  %vm703_vm2 = vcmp.eq.s32.totalorder %v653_v9, %v2115_v20 }
  0xf2   : > { %v522_v31 = vadd.s32 %v521_v30, %v517_v29  ;;  %v674_v15 = vpop.permute.xlu1 %673  ;;  %vm705_vm3 = vcmp.eq.s32.totalorder %v667_v14, %v2115_v20  ;;  %v712_v24 = vsel %vm704_vm15, 1.0, %v1937_v1  ;;  %v711_v7 = vsel %vm703_vm2, 1.0, %v1937_v1 }
  0xf3   : > { %vm706_vm5 = vcmp.eq.s32.totalorder %v674_v15, %v2115_v20  ;;  %v713_v25 = vsel %vm705_vm3, 1.0, %v1937_v1  ;;  %v727_v30 = vsel %vm719_vm4, %v712_v24, 0.0 }
  0xf4   : > { %v523_v32 = vadd.s32 536870912, %v522_v31  ;;  %v714_v26 = vsel %vm706_vm5, 1.0, %v1937_v1  ;;  %vm817_vm5 = vcmask 1041409  }
  0xf5   : > { %v681_v16 = vpop.permute.xlu0 %680 }
  0xf6   : > { %v524_v33 = vshrl.u32 %v523_v32, 30  ;;  %v688_v17 = vpop.permute.xlu1 %687  ;;  %vm707_vm6 = vcmp.eq.s32.totalorder %v681_v16, %v2115_v20  ;;  %v734_v32 = vsel %vm719_vm4, %v713_v25, 0.0 }
  0xf7   : > { %vm708_vm7 = vcmp.eq.s32.totalorder %v688_v17, %v2115_v20  ;;  %v715_v27 = vsel %vm707_vm6, 1.0, %v1937_v1  ;;  %vm820_vm6 = vcmask 1042434  }
  0xf8   : > { %v525_v35 = vshll.u32 %v524_v33, 30  ;;  %v548_v57 = vsub.s32 4, %v524_v33  ;;  %v716_v29 = vsel %vm708_vm7, 1.0, %v1937_v1  ;;  %vm823_vm7 = vcmask 1043459  }
  0xfa   : > { %v526_v36 = vsub.s32 %v522_v31, %v525_v35  ;;  %v549_v58 = vsel %vm464_vm9, %v548_v57, %v524_v33  ;;  %v702_v21 = vpop.permute.xlu1 %701  ;;  %v720_v31 = vsel %vm719_vm4, %v711_v7, 0.0 }
  0xfb   : > { %v551_v59 = vsel %vm463_vm10, 0, %v549_v58 }
  0xfc   : > { %v528_v37 = vsub.s32 0, %v526_v36  ;;  %v555_v60 = vand.u32 3, %v551_v59 }
  0xfe   : > { %v1729_v38 = vmin.u32 %v528_v37, %v526_v36  ;;  %vm560_vm11 = vcmp.eq.s32.totalorder %v555_v60, 2  ;;  %vm557_vm12 = vcmp.eq.s32.totalorder %v555_v60, 0  ;;  %vm556_vm13 = vcmp.lt.s32.totalorder %v555_v60, 2 }
  0xff   : > { %v748_v37 = vsel %vm719_vm4, %v715_v27, 0.0 }
 0x100   : > { %v530_v39 = vclz %v1729_v38  ;;  %v755_v38 = vsel %vm719_vm4, %v716_v29, 0.0 }
 0x102   : > { %v1730_v40 = vadd.s32 4294967294, %v530_v39  ;;  %v728_v39 = vrot.slane %v727_v30, 4 }
 0x104   : > { %vm1731_vm8 = vcmp.lt.s32.totalorder %v1730_v40, 0 }
 0x105   : > { %v533_v41 = vsel %vm1731_vm8, 0, %v1730_v40  ;;  %v721_v40 = vrot.slane %v720_v31, 4 }
 0x106   : > { %v534_v43 = vsub.s32 32, %v533_v41  ;;  %v538_v44 = vsub.s32 4294967266, %v533_v41  ;;  %v535_v45 = vshll.u32 %v526_v36, %v533_v41  ;;  %v741_v36 = vsel %vm719_vm4, %v714_v26, 0.0 }
 0x107   : > { %v735_v41 = vrot.slane %v734_v32, 4 }
 0x108   : > { %v536_v46 = vshrl.u32 %v518_v42, %v534_v43  ;;  %v539_v47 = vadd.s32 127, %v538_v44  ;;  %v742_v44 = vrot.slane %v741_v36, 4 }
 0x10a   : > { %v537_v48 = vor.u32 %v536_v46, %v535_v45  ;;  %v540_v49 = vshll.u32 %v539_v47, 23  ;;  %v749_v45 = vrot.slane %v748_v37, 4  ;;  %v756_v46 = vrot.slane %v755_v38, 4 }
 0x10c   : > { %v541_v50 = vor.u32 4788187, %v540_v49  ;;  %v544_v52 = vcvt.s32.f32 %v537_v48  ;;  %v729_v48 = vadd.f32 %v728_v39, %v727_v30  ;;  %v722_v49 = vadd.f32 %v721_v40, %v720_v31 }
 0x10e   : > { %v542_v51 = vand.u32 2147483647, %v541_v50  ;;  %v736_v50 = vadd.f32 %v735_v41, %v734_v32  ;;  %v723_v57 = vrot.slane %v722_v49, 2 }
 0x110   : > { %v545_v53 = vmul.f32 %v544_v52, %v542_v51  ;;  %v743_v52 = vadd.f32 %v742_v44, %v741_v36  ;;  %v737_v58 = vrot.slane %v736_v50, 2 }
 0x112   : > { %v546_v54 = vxor.u32 2147483648, %v545_v53  ;;  %v744_v60 = vrot.slane %v743_v52, 2 }
 0x114   : > { %v547_v55 = vsel %vm464_vm9, %v546_v54, %v545_v53  ;;  %vm710_vm9 = vcmp.eq.s32.totalorder %v702_v21, %v2115_v20  ;;  %v750_v53 = vadd.f32 %v749_v45, %v748_v37  ;;  %v757_v54 = vadd.f32 %v756_v46, %v755_v38 }
 0x115   : > { %v550_v56 = vsel %vm463_vm10, %v2087_v28, %v547_v55  ;;  %v695_v28 = vpop.permute.xlu0 %694  ;;  %v718_v35 = vsel %vm710_vm9, 1.0, %v1937_v1  ;;  %vm829_vm9 = vcmask 1045509  }
 0x116   : > { %1845 = vcosq.f32 %v550_v56  ;;  %vm709_vm8 = vcmp.eq.s32.totalorder %v695_v28, %v2115_v20  ;;  %v769_v43 = vsel %vm719_vm4, %v718_v35, 0.0 }
 0x117   : > { %1847 = vsinq.f32 %v550_v56  ;;  %v717_v33 = vsel %vm709_vm8, 1.0, %v1937_v1  ;;  %v770_v51 = vrot.slane %v769_v43, 4  ;;  %v730_v56 = vrot.slane %v729_v48, 2 }
 0x118   : > { %v762_v42 = vsel %vm719_vm4, %v717_v33, 0.0  ;;  %vm826_vm8 = vcmask 1044484  }
 0x119   : > { %v763_v47 = vrot.slane %v762_v42, 4  ;;  %v771_v59 = vadd.f32 %v770_v51, %v769_v43 }
 0x11b   : > { %v764_v55 = vadd.f32 %v763_v47, %v762_v42 }
 0x123   : > { %v1846_v61 = vpop.eup %1845 }
 0x124   : > { %v1848_v62 = vpop.eup %1847  ;;  %v561_v63 = vxor.u32 2147483648, %v1846_v61 }
 0x125   : > { %v558_v0 = vxor.u32 2147483648, %v1848_v62 }
 0x126   : > { %v562_v2 = vsel %vm560_vm11, %v561_v63, %v1848_v62  ;;  %v758_v62 = vrot.slane %v757_v54, 2  ;;  %v765_v63 = vrot.slane %v764_v55, 2 }
 0x127   : > { %v559_v3 = vsel %vm557_vm12, %v1846_v61, %v558_v0  ;;  %v751_v61 = vrot.slane %v750_v53, 2  ;;  %v731_v0 = vadd.f32 %v730_v56, %v729_v48 }
 0x128   : > { %v563_v34 = vsel %vm556_vm13, %v559_v3, %v562_v2  ;;  %v724_v2 = vadd.f32 %v723_v57, %v722_v49  ;;  %v738_v3 = vadd.f32 %v737_v58, %v736_v50  ;;  %v759_v9 = vadd.f32 %v758_v62, %v757_v54 }
 0x129   : > { %v564_v4 = vsel %vm554_vm14, nan, %v563_v34  ;;  %v772_v34 = vrot.slane %v771_v59, 2  ;;  %v752_v6 = vadd.f32 %v751_v61, %v750_v53  ;;  %v766_v14 = vadd.f32 %v765_v63, %v764_v55 }
 0x12a   : > { %v2108_v5 = vmul.f32 0.044194173, %v564_v4  ;;  %v745_v4 = vadd.f32 %v744_v60, %v743_v52  ;;  %v732_v15 = vrot.slane %v731_v0, 1  ;;  %v725_v16 = vrot.slane %v724_v2, 1 }
 0x12b   : > { %v739_v17 = vrot.slane %v738_v3, 1  ;;  %v773_v28 = vadd.f32 %v772_v34, %v771_v59  ;;  %v753_v24 = vrot.slane %v752_v6, 1  ;;  %v760_v7 = vrot.slane %v759_v9, 1 }
 0x12c   : > { %1779 = vmatmul.mubr.msk.f32.vlgmr.msra.gmra.mxu1 %vm2395_vm1, %v2108_v5  ;;  %v746_v21 = vrot.slane %v745_v4, 1  ;;  %v767_v25 = vrot.slane %v766_v14, 1  ;;  %v2141_v26 = vadd.f32 %v732_v15, %v731_v0  ;;  %v2143_v27 = vadd.f32 %v725_v16, %v724_v2 }
 0x12d   : > { %1783 = vmatprep.mubr.msk.f32.mxu1 %vm1938_vm0, %v1937_v1  ;;  %v2145_v29 = vadd.f32 %v739_v17, %v738_v3  ;;  %v774_v30 = vrot.slane %v773_v28, 1  ;;  %v2149_v32 = vadd.f32 %v753_v24, %v752_v6  ;;  %v2151_v33 = vadd.f32 %v760_v7, %v759_v9 }
 0x12e   : > { %v2147_v31 = vadd.f32 %v746_v21, %v745_v4  ;;  %v2153_v35 = vadd.f32 %v767_v25, %v766_v14  ;;  %vm777_vm10 = vcmp.gt.f32.partialorder %v2141_v26, 0.5  ;;  %vm776_vm11 = vcmp.gt.f32.partialorder %v2143_v27, 0.5 }
 0x12f   : > { %vm778_vm12 = vcmp.gt.f32.partialorder %v2145_v29, 0.5  ;;  %v2158_v36 = vadd.f32 %v774_v30, %v773_v28  ;;  %vm780_vm14 = vcmp.gt.f32.partialorder %v2149_v32, 0.5  ;;  %vm781_vm15 = vcmp.gt.f32.partialorder %v2151_v33, 0.5 }
 0x130   : > { %vm779_vm13 = vcmp.gt.f32.partialorder %v2147_v31, 0.5  ;;  %vm782_vm2 = vcmp.gt.f32.partialorder %v2153_v35, 0.5 }
 0x131   : > { %vm783_vm3 = vcmp.gt.f32.partialorder %v2158_v36, 0.5 }
 0x1ec   : > { %v641_v37 = vpop.f32.mrf.mxu1 }
 0x1ed   : > { %v785_v38 = vrot.slane %v641_v37, 1  ;;  %v786_v39 = vrot.slane %v641_v37, 2  ;;  %v787_v40 = vrot.slane %v641_v37, 3  ;;  %v788_v41 = vrot.slane %v641_v37, 4 }
 0x1ee   : > { %v1780_v42 = vpop.f32.mrf.mxu1  ;;  %v789_v43 = vrot.slane %v641_v37, 5  ;;  %v790_v44 = vrot.slane %v641_v37, 6  ;;  %v791_v47 = vrot.slane %v641_v37, 7  ;;  %v800_v52 = vsel %vm776_vm11, %v641_v37, -1e+30 }
 0x1ef   : > { %v801_v45 = vsel %vm777_vm10, %v785_v38, -1e+30  ;;  %v802_v46 = vsel %vm778_vm12, %v786_v39, -1e+30  ;;  %v803_v48 = vsel %vm779_vm13, %v787_v40, -1e+30 }
 0x1f0   : > { %v804_v49 = vsel %vm780_vm14, %v788_v41, -1e+30  ;;  %v816_v50 = vrot.slane %v801_v45, 7  ;;  %v819_v51 = vrot.slane %v802_v46, 6  ;;  %v805_v53 = vsel %vm781_vm15, %v789_v43, -1e+30 }
 0x1f1   : > { %v806_v54 = vsel %vm782_vm2, %v790_v44, -1e+30  ;;  %v822_v56 = vrot.slane %v803_v48, 5  ;;  %v807_v57 = vsel %vm783_vm3, %v791_v47, -1e+30  ;;  %v825_v59 = vrot.slane %v804_v49, 4 }
 0x1f2   : > { %v818_v55 = vsel %vm817_vm5, %v816_v50, %v800_v52  ;;  %v828_v61 = vrot.slane %v805_v53, 3  ;;  %vm832_vm10 = vcmask 1046534   ;;  %v831_v63 = vrot.slane %v806_v54, 2 }
 0x1f3   : > { %v821_v58 = vsel %vm820_vm6, %v819_v51, %v818_v55  ;;  %vm835_vm11 = vcmask 1047559   ;;  %v834_v2 = vrot.slane %v807_v57, 1 }
 0x1f4   : > { %v824_v60 = vsel %vm823_vm7, %v822_v56, %v821_v58 }
 0x1f5   : > { %v827_v62 = vsel %vm826_vm8, %v825_v59, %v824_v60 }
 0x1f6   : > { %v830_v0 = vsel %vm829_vm9, %v828_v61, %v827_v62 }
 0x1f7   : > { %v833_v3 = vsel %vm832_vm10, %v831_v63, %v830_v0 }
 0x1f8   : > { %v836_v34 = vsel %vm835_vm11, %v834_v2, %v833_v3 }
 0x1f9   : > { %v838_v4 = vsel %vm719_vm4, %v836_v34, -inf }
 0x1fa   : > { %839 = vmax.xlane.f32.xlu0 %v838_v4 }
 0x210   : > { %1048 = vrot.lane.b32.xlu0 %v2108_v5, %s1945_s30 }
 0x283   : > { %v840_v6 = vpop.xlane.xlu0 %839 }
 0x284   : > { %v842_v9 = vrot.slane %v840_v6, 1  ;;  %v843_v14 = vrot.slane %v840_v6, 2  ;;  %v844_v15 = vrot.slane %v840_v6, 3  ;;  %v845_v16 = vrot.slane %v840_v6, 4 }
 0x285   : > { %v846_v17 = vrot.slane %v840_v6, 5  ;;  %v847_v28 = vrot.slane %v840_v6, 6  ;;  %v848_v21 = vrot.slane %v840_v6, 7  ;;  %v857_v24 = vsub.f32 %v800_v52, %v840_v6 }
 0x286   : > { %v858_v7 = vsub.f32 %v801_v45, %v842_v9  ;;  %v859_v25 = vsub.f32 %v802_v46, %v843_v14  ;;  %v860_v30 = vsub.f32 %v803_v48, %v844_v15  ;;  %v861_v37 = vsub.f32 %v804_v49, %v845_v16  ;;  %v1737_v15 = vld [vmem:[%s2054_s23 + $0x8] sm:$0xff]  ;;  %s375_s23 = scalar_lea.vmem %s2394_s7, %s1720_s11 }
 0x287   : > { %v862_v38 = vsub.f32 %v805_v53, %v846_v17  ;;  %v863_v39 = vsub.f32 %v806_v54, %v847_v28  ;;  %v865_v40 = vmul.f32 1.442695, %v857_v24  ;;  %v864_v41 = vsub.f32 %v807_v57, %v848_v21 }
 0x288   : > { %v867_v42 = vmul.f32 1.442695, %v858_v7  ;;  %v869_v43 = vmul.f32 1.442695, %v859_v25  ;;  %v871_v5 = vmul.f32 1.442695, %v860_v30  ;;  %v1135_v16 = vrot.slane %v1737_v15, %v656_v10 }
 0x289   : > { %1849 = vpow2.f32 %v865_v40  ;;  %v873_v44 = vmul.f32 1.442695, %v861_v37  ;;  %v875_v47 = vmul.f32 1.442695, %v862_v38  ;;  %v877_v50 = vmul.f32 1.442695, %v863_v39 }
 0x28a   : > { %1851 = vpow2.f32 %v867_v42  ;;  %v879_v51 = vmul.f32 1.442695, %v864_v41  ;;  %v1142_v17 = vrot.slane %v1737_v15, %v663_v12  ;;  %v1128_v28 = vrot.slane %v1737_v15, %v649_v11 }
 0x28b   : > { %1853 = vpow2.f32 %v869_v43  ;;  %v1149_v21 = vrot.slane %v1737_v15, %v670_v13  ;;  %v1156_v24 = vrot.slane %v1737_v15, %v677_v18  ;;  %v1163_v7 = vrot.slane %v1737_v15, %v684_v19 }
 0x28c   : > { %1855 = vpow2.f32 %v871_v5  ;;  %1144 = vbcast.lane.b32.xlu0 %v1142_v17, 256  ;;  %v1170_v10 = vrot.slane %v1737_v15, %v691_v22  ;;  %v1177_v12 = vrot.slane %v1737_v15, %v698_v23 }
 0x28d   : > { %1857 = vpow2.f32 %v873_v44 }
 0x28e   : > { %1859 = vpow2.f32 %v875_v47 }
 0x28f   : > { %1861 = vpow2.f32 %v877_v50 }
 0x290   : > { %1863 = vpow2.f32 %v879_v51  ;;  %1151 = vbcast.lane.b32.xlu0 %v1149_v21, 256 }
 0x294   : > { %1165 = vbcast.lane.b32.xlu0 %v1163_v7, 256 }
 0x296   : > { %v1850_v45 = vpop.eup %1849 }
 0x297   : > { %v1852_v46 = vpop.eup %1851  ;;  %v2187_v55 = vmul.f32 %v1850_v45, %v2143_v27 }
 0x298   : > { %v1854_v48 = vpop.eup %1853  ;;  %v2181_v49 = vmul.f32 %v1852_v46, %v2141_v26  ;;  %1179 = vbcast.lane.b32.xlu0 %v1177_v12, 256 }
 0x299   : > { %v1856_v52 = vpop.eup %1855  ;;  %v2184_v53 = vmul.f32 %v1854_v48, %v2145_v29 }
 0x29a   : > { %v1858_v54 = vpop.eup %1857  ;;  %v2190_v56 = vmul.f32 %v1856_v52, %v2147_v31  ;;  %v897_v57 = vrot.slane %v2181_v49, 7 }
 0x29b   : > { %v1860_v58 = vpop.eup %1859  ;;  %v2194_v59 = vmul.f32 %v1858_v54, %v2149_v32  ;;  %v899_v26 = vrot.slane %v2184_v53, 6 }
 0x29c   : > { %v1862_v60 = vpop.eup %1861  ;;  %v2198_v61 = vmul.f32 %v1860_v58, %v2151_v33  ;;  %v898_v29 = vsel %vm817_vm5, %v897_v57, %v2187_v55  ;;  %v901_v27 = vrot.slane %v2190_v56, 5 }
 0x29d   : > { %v1864_v31 = vpop.eup %1863  ;;  %v2204_v62 = vmul.f32 %v1862_v60, %v2153_v35  ;;  %v900_v63 = vsel %vm820_vm6, %v899_v26, %v898_v29  ;;  %v903_v32 = vrot.slane %v2194_v59, 4 }
 0x29e   : > { %v2209_v0 = vmul.f32 %v1864_v31, %v2158_v36  ;;  %v902_v33 = vsel %vm823_vm7, %v901_v27, %v900_v63  ;;  %v905_v2 = vrot.slane %v2198_v61, 3  ;;  %v567_v36 = vld [vmem:[%s2224_s10] sm:$0xff]  ;;  %v1735_v27 = vld [vmem:[%s2045_s20 + $0x8] sm:$0xff]  ;;  %s1946_s20 = smov 16  }
 0x29f   : > { %v904_v3 = vsel %vm826_vm8, %v903_v32, %v902_v33  ;;  %v907_v34 = vrot.slane %v2204_v62, 2  ;;  %1782 = vmatpush3.msra.mxu1 %v567_v36 }
 0x2a0   : > { %v906_v4 = vsel %vm829_vm9, %v905_v2, %v904_v3  ;;  %v909_v35 = vrot.slane %v2209_v0, 1  ;;  %1786 = vmatprep.subr.mxu1 %v1937_v1 }
 0x2a1   : > { %v908_v6 = vsel %vm832_vm10, %v907_v34, %v906_v4 }
 0x2a2   : > { %v910_v9 = vsel %vm835_vm11, %v909_v35, %v908_v6 }
 0x2a3   : > { %v912_v14 = vsel %vm719_vm4, %v910_v9, 0.0 }
 0x2a4   : > { %913 = vadd.xlane.f32.xlu1 %v912_v14 }
 0x2b5   : > { %1137 = vbcast.lane.b32.xlu1 %v1135_v16, 256 }
 0x2b9   : > { %1130 = vbcast.lane.b32.xlu1 %v1128_v28, 256 }
 0x2bd   : > { %1158 = vbcast.lane.b32.xlu1 %v1156_v24, 256 }
 0x2c1   : > { %1172 = vbcast.lane.b32.xlu1 %v1170_v10, 256 }
 0x32d   : > { %v914_v11 = vpop.xlane.xlu1 %913 }
 0x32e   : > { %v915_v13 = vadd.f32 1e-30, %v914_v11 }
 0x330   : > { %v917_v25 = vrot.slane %v915_v13, 1  ;;  %v918_v30 = vrot.slane %v915_v13, 2  ;;  %v919_v37 = vrot.slane %v915_v13, 3  ;;  %1865 = vrcp.f32 %v915_v13 }
 0x331   : > { %v920_v18 = vrot.slane %v915_v13, 4  ;;  %v921_v38 = vrot.slane %v915_v13, 5  ;;  %v922_v19 = vrot.slane %v915_v13, 6  ;;  %v923_v39 = vrot.slane %v915_v13, 7  ;;  %v1138_v32 = vpop.permute.xlu1 %1137 }
 0x332   : > { %1867 = vrcp.f32 %v917_v25  ;;  %vm1182_vm12 = vcmp.eq.s32.totalorder %v1138_v32, %v2115_v20 }
 0x333   : > { %1869 = vrcp.f32 %v918_v30  ;;  %v1190_v6 = vsel %vm1182_vm12, 1.0, %v1937_v1 }
 0x334   : > { %1871 = vrcp.f32 %v919_v37  ;;  %v1204_v15 = vsel %vm719_vm4, %v1190_v6, 0.0 }
 0x335   : > { %1873 = vrcp.f32 %v920_v18  ;;  %v1131_v33 = vpop.permute.xlu1 %1130  ;;  %v1205_v10 = vrot.slane %v1204_v15, 4 }
 0x336   : > { %1875 = vrcp.f32 %v921_v38  ;;  %vm1181_vm14 = vcmp.eq.s32.totalorder %v1131_v33, %v2115_v20 }
 0x337   : > { %1877 = vrcp.f32 %v922_v19  ;;  %v1189_v14 = vsel %vm1181_vm14, 1.0, %v1937_v1  ;;  %v1206_v19 = vadd.f32 %v1205_v10, %v1204_v15 }
 0x338   : > { %1879 = vrcp.f32 %v923_v39 }
 0x339   : > { %v1159_v3 = vpop.permute.xlu1 %1158 }
 0x33d   : > { %v1866_v8 = vpop.eup %1865  ;;  %v1173_v4 = vpop.permute.xlu1 %1172 }
 0x33e   : > { %v933_v5 = vmul.f32 %v1866_v8, %v2187_v55  ;;  %vm1187_vm3 = vcmp.eq.s32.totalorder %v1173_v4, %v2115_v20 }
 0x33f   : > { %v1868_v22 = vpop.eup %1867  ;;  %v1195_v28 = vsel %vm1187_vm3, 1.0, %v1937_v1 }
 0x340   : > { %v1870_v23 = vpop.eup %1869  ;;  %v935_v40 = vmul.f32 %v1868_v22, %v2181_v49  ;;  %v1239_v13 = vsel %vm719_vm4, %v1195_v28, 0.0 }
 0x341   : > { %v1872_v41 = vpop.eup %1871  ;;  %v937_v42 = vmul.f32 %v1870_v23, %v2184_v53  ;;  %v1240_v8 = vrot.slane %v1239_v13, 4 }
 0x342   : > { %v1874_v43 = vpop.eup %1873  ;;  %v939_v44 = vmul.f32 %v1872_v41, %v2190_v56  ;;  %v956_v47 = vrot.slane %v935_v40, 7 }
 0x343   : > { %v1876_v50 = vpop.eup %1875  ;;  %v941_v51 = vmul.f32 %v1874_v43, %v2194_v59  ;;  %v958_v45 = vrot.slane %v937_v42, 6  ;;  %v1207_v43 = vrot.slane %v1206_v19, 2 }
 0x344   : > { %v1878_v46 = vpop.eup %1877  ;;  %v943_v48 = vmul.f32 %v1876_v50, %v2198_v61  ;;  %v957_v52 = vsel %vm817_vm5, %v956_v47, %v933_v5  ;;  %v960_v49 = vrot.slane %v939_v44, 5  ;;  %v1241_v44 = vadd.f32 %v1240_v8, %v1239_v13 }
 0x345   : > { %v1880_v54 = vpop.eup %1879  ;;  %v945_v53 = vmul.f32 %v1878_v46, %v2204_v62  ;;  %v959_v57 = vsel %vm820_vm6, %v958_v45, %v957_v52  ;;  %v962_v55 = vrot.slane %v941_v51, 4  ;;  %v1049_v62 = vpop.permute.xlu0 %1048 }
 0x346   : > { %v947_v56 = vmul.f32 %v1880_v54, %v2209_v0  ;;  %v961_v58 = vsel %vm823_vm7, %v960_v49, %v959_v57  ;;  %v964_v26 = vrot.slane %v943_v48, 3  ;;  %v1208_v48 = vadd.f32 %v1207_v43, %v1206_v19 }
 0x347   : > { %v963_v59 = vsel %vm826_vm8, %v962_v55, %v961_v58  ;;  %v966_v60 = vrot.slane %v945_v53, 2  ;;  %v1242_v49 = vrot.slane %v1241_v44, 2 }
 0x348   : > { %v965_v29 = vsel %vm829_vm9, %v964_v26, %v963_v59  ;;  %v968_v61 = vrot.slane %v947_v56, 1  ;;  %v1209_v58 = vrot.slane %v1208_v48, 1 }
 0x349   : > { %v967_v31 = vsel %vm832_vm10, %v966_v60, %v965_v29  ;;  %v1145_v0 = vpop.permute.xlu0 %1144  ;;  %v1243_v59 = vadd.f32 %v1242_v49, %v1241_v44 }
 0x34a   : > { %v969_v63 = vsel %vm835_vm11, %v968_v61, %v967_v31  ;;  %vm1183_vm13 = vcmp.eq.s32.totalorder %v1145_v0, %v2115_v20 }
 0x34b   : > { %1784 = vmatmul.mubr.msk.f32.vlgmr.msra.gmra.mxu1 %vm719_vm4, %v969_v63  ;;  %v1191_v9 = vsel %vm1183_vm13, 1.0, %v1937_v1  ;;  %v2293_v63 = vadd.f32 %v1209_v58, %v1208_v48  ;;  %v1244_v32 = vrot.slane %v1243_v59, 1 }
 0x34c   : > { %1787 = vmatpush3.xpose.msk.msra.mxu1 %vm2395_vm1, %v1735_v27  ;;  %1788 = vmatprep.mubr.msk.f32.mxu1 %vm1938_vm0, %v1937_v1  ;;  %v1211_v24 = vsel %vm719_vm4, %v1191_v9, 0.0 }
 0x34d   : > { %1791 = vmatprep.subr.mxu1 %v1937_v1  ;;  %v1152_v2 = vpop.permute.xlu0 %1151  ;;  %v1212_v30 = vrot.slane %v1211_v24, 4  ;;  %v2308_v9 = vadd.f32 %v1244_v32, %v1243_v59 }
 0x34e   : > { %vm1184_vm15 = vcmp.eq.s32.totalorder %v1152_v2, %v2115_v20 }
 0x34f   : > { %1789 = vmatmul.mubr.msk.f32.vlgmr.msra.gmra.mxu1 %vm2395_vm1, %v1049_v62  ;;  %v1192_v36 = vsel %vm1184_vm15, 1.0, %v1937_v1  ;;  %v1213_v23 = vadd.f32 %v1212_v30, %v1211_v24 }
 0x350   : > { %1793 = vmatprep.mubr.msk.f32.mxu1 %vm1938_vm0, %v1937_v1  ;;  %vm1185_vm0 = vcmp.eq.s32.totalorder %v1159_v3, %v2115_v20  ;;  %v1218_v7 = vsel %vm719_vm4, %v1192_v36, 0.0 }
 0x351   : > { %v1166_v34 = vpop.permute.xlu0 %1165  ;;  %v1193_v16 = vsel %vm1185_vm0, 1.0, %v1937_v1  ;;  %v1219_v18 = vrot.slane %v1218_v7, 4  ;;  %v1214_v50 = vrot.slane %v1213_v23, 2 }
 0x352   : > { %vm1186_vm2 = vcmp.eq.s32.totalorder %v1166_v34, %v2115_v20  ;;  %v1225_v12 = vsel %vm719_vm4, %v1193_v16, 0.0 }
 0x353   : > { %v1194_v17 = vsel %vm1186_vm2, 1.0, %v1937_v1  ;;  %v1226_v38 = vrot.slane %v1225_v12, 4  ;;  %v1220_v41 = vadd.f32 %v1219_v18, %v1218_v7  ;;  %v1215_v53 = vadd.f32 %v1214_v50, %v1213_v23 }
 0x354   : > { %v1232_v11 = vsel %vm719_vm4, %v1194_v17, 0.0  ;;  %vm1259_vm2 = vcmp.gt.f32.partialorder %v2308_v9, 0.5 }
 0x355   : > { %v1180_v35 = vpop.permute.xlu0 %1179  ;;  %v1233_v39 = vrot.slane %v1232_v11, 4  ;;  %v1227_v42 = vadd.f32 %v1226_v38, %v1225_v12  ;;  %v1221_v45 = vrot.slane %v1220_v41, 2  ;;  %v1216_v29 = vrot.slane %v1215_v53, 1 }
 0x356   : > { %vm1188_vm1 = vcmp.eq.s32.totalorder %v1180_v35, %v2115_v20  ;;  %v1197_v20 = vsel %vm719_vm4, %v1189_v14, 0.0 }
 0x357   : > { %v1196_v21 = vsel %vm1188_vm1, 1.0, %v1937_v1  ;;  %v1198_v37 = vrot.slane %v1197_v20, 4  ;;  %v1234_v5 = vadd.f32 %v1233_v39, %v1232_v11  ;;  %v1228_v46 = vrot.slane %v1227_v42, 2 }
 0x358   : > { %v1246_v25 = vsel %vm719_vm4, %v1196_v21, 0.0  ;;  %v1222_v55 = vadd.f32 %v1221_v45, %v1220_v41  ;;  %v2297_v2 = vadd.f32 %v1216_v29, %v1215_v53  ;;  %vm1254_vm1 = vcmp.gt.f32.partialorder %v2293_v63, 0.5 }
 0x359   : > { %v1247_v22 = vrot.slane %v1246_v25, 4  ;;  %v1199_v40 = vadd.f32 %v1198_v37, %v1197_v20  ;;  %v1235_v52 = vrot.slane %v1234_v5, 2  ;;  %v1229_v56 = vadd.f32 %v1228_v46, %v1227_v42 }
 0x35a   : > { %v1223_v27 = vrot.slane %v1222_v55, 1  ;;  %vm1255_vm12 = vcmp.gt.f32.partialorder %v2297_v2, 0.5 }
 0x35b   : > { %v1248_v47 = vadd.f32 %v1247_v22, %v1246_v25  ;;  %v1200_v51 = vrot.slane %v1199_v40, 2  ;;  %v1236_v26 = vadd.f32 %v1235_v52, %v1234_v5  ;;  %v1230_v31 = vrot.slane %v1229_v56, 1 }
 0x35c   : > { %v2301_v34 = vadd.f32 %v1223_v27, %v1222_v55 }
 0x35d   : > { %v1249_v54 = vrot.slane %v1248_v47, 2  ;;  %v1201_v57 = vadd.f32 %v1200_v51, %v1199_v40  ;;  %v1237_v62 = vrot.slane %v1236_v26, 1  ;;  %v2303_v35 = vadd.f32 %v1230_v31, %v1229_v56 }
 0x35e   : > { %vm1256_vm14 = vcmp.gt.f32.partialorder %v2301_v34, 0.5 }
 0x35f   : > { %v1250_v60 = vadd.f32 %v1249_v54, %v1248_v47  ;;  %v1202_v61 = vrot.slane %v1201_v57, 1  ;;  %v2306_v6 = vadd.f32 %v1237_v62, %v1236_v26  ;;  %vm1257_vm15 = vcmp.gt.f32.partialorder %v2303_v35, 0.5 }
 0x361   : > { %v1251_v0 = vrot.slane %v1250_v60, 1  ;;  %v2299_v3 = vadd.f32 %v1202_v61, %v1201_v57  ;;  %vm1258_vm0 = vcmp.gt.f32.partialorder %v2306_v6, 0.5 }
 0x363   : > { %v2310_v14 = vadd.f32 %v1251_v0, %v1250_v60  ;;  %vm1253_vm13 = vcmp.gt.f32.partialorder %v2299_v3, 0.5 }
 0x365   : > { %vm1260_vm3 = vcmp.gt.f32.partialorder %v2310_v14, 0.5 }
 0x40b   : > { %v2295_v33 = vpop.f32.mrf.mxu1 }
 0x40d   : > { %v1785_v4 = vpop.f32.mrf.mxu1 }
 0x40f   : > { %v1121_v36 = vpop.f32.mrf.mxu1 }
 0x410   : > { %v1262_v15 = vrot.slane %v1121_v36, 1  ;;  %v1263_v16 = vrot.slane %v1121_v36, 2  ;;  %v1264_v17 = vrot.slane %v1121_v36, 3  ;;  %v1265_v28 = vrot.slane %v1121_v36, 4 }
 0x411   : > { %v1790_v21 = vpop.f32.mrf.mxu1  ;;  %v1266_v24 = vrot.slane %v1121_v36, 5  ;;  %v1267_v20 = vrot.slane %v1121_v36, 6  ;;  %v1268_v12 = vrot.slane %v1121_v36, 7  ;;  %v1277_v37 = vsel %vm1253_vm13, %v1121_v36, -1e+30 }
 0x412   : > { %v1278_v7 = vsel %vm1254_vm1, %v1262_v15, -1e+30  ;;  %v1279_v10 = vsel %vm1255_vm12, %v1263_v16, -1e+30  ;;  %v1280_v11 = vsel %vm1256_vm14, %v1264_v17, -1e+30 }
 0x413   : > { %v1281_v13 = vsel %vm1257_vm15, %v1265_v28, -1e+30  ;;  %v1293_v25 = vrot.slane %v1278_v7, 7  ;;  %v1295_v30 = vrot.slane %v1279_v10, 6  ;;  %v1282_v18 = vsel %vm1258_vm0, %v1266_v24, -1e+30 }
 0x414   : > { %v1283_v38 = vsel %vm1259_vm2, %v1267_v20, -1e+30  ;;  %v1297_v39 = vrot.slane %v1280_v11, 5  ;;  %v1284_v8 = vsel %vm1260_vm3, %v1268_v12, -1e+30  ;;  %v1299_v23 = vrot.slane %v1281_v13, 4 }
 0x415   : > { %v1294_v19 = vsel %vm817_vm5, %v1293_v25, %v1277_v37  ;;  %v1301_v41 = vrot.slane %v1282_v18, 3  ;;  %v1303_v43 = vrot.slane %v1283_v38, 2  ;;  %v1305_v44 = vrot.slane %v1284_v8, 1 }
 0x416   : > { %v1296_v22 = vsel %vm820_vm6, %v1295_v30, %v1294_v19 }
 0x417   : > { %v1298_v40 = vsel %vm823_vm7, %v1297_v39, %v1296_v22 }
 0x418   : > { %v1300_v42 = vsel %vm826_vm8, %v1299_v23, %v1298_v40 }
 0x419   : > { %v1302_v5 = vsel %vm829_vm9, %v1301_v41, %v1300_v42 }
 0x41a   : > { %v1304_v47 = vsel %vm832_vm10, %v1303_v43, %v1302_v5  ;;  %v1736_v43 = vld [vmem:[%s2224_s10 + $0x8] sm:$0xff] }
 0x41b   : > { %v1306_v50 = vsel %vm835_vm11, %v1305_v44, %v1304_v47  ;;  %1792 = vmatpush3.msra.mxu1 %v1736_v43 }
 0x41c   : > { %v1308_v51 = vsel %vm719_vm4, %v1306_v50, -inf }
 0x41d   : > { %1309 = vmax.xlane.f32.xlu1 %v1308_v51 }
 0x4a6   : > { %v1310_v45 = vpop.xlane.xlu1 %1309 }
 0x4a7   : > { %v1312_v46 = vrot.slane %v1310_v45, 1  ;;  %v1313_v48 = vrot.slane %v1310_v45, 2  ;;  %v1314_v52 = vrot.slane %v1310_v45, 3  ;;  %v1315_v49 = vrot.slane %v1310_v45, 4 }
 0x4a8   : > { %v1316_v54 = vrot.slane %v1310_v45, 5  ;;  %v1317_v53 = vrot.slane %v1310_v45, 6  ;;  %v1318_v57 = vrot.slane %v1310_v45, 7  ;;  %v1327_v55 = vsub.f32 %v1277_v37, %v1310_v45 }
 0x4a9   : > { %v1328_v56 = vsub.f32 %v1278_v7, %v1312_v46  ;;  %v1329_v58 = vsub.f32 %v1279_v10, %v1313_v48  ;;  %v1330_v26 = vsub.f32 %v1280_v11, %v1314_v52  ;;  %v1331_v59 = vsub.f32 %v1281_v13, %v1315_v49 }
 0x4aa   : > { %v1332_v60 = vsub.f32 %v1282_v18, %v1316_v54  ;;  %v1333_v29 = vsub.f32 %v1283_v38, %v1317_v53  ;;  %v1335_v61 = vmul.f32 1.442695, %v1327_v55  ;;  %v1334_v27 = vsub.f32 %v1284_v8, %v1318_v57 }
 0x4ab   : > { %v1337_v31 = vmul.f32 1.442695, %v1328_v56  ;;  %v1339_v62 = vmul.f32 1.442695, %v1329_v58  ;;  %v1341_v32 = vmul.f32 1.442695, %v1330_v26 }
 0x4ac   : > { %1881 = vpow2.f32 %v1335_v61  ;;  %v1343_v0 = vmul.f32 1.442695, %v1331_v59  ;;  %v1345_v4 = vmul.f32 1.442695, %v1332_v60  ;;  %v1347_v36 = vmul.f32 1.442695, %v1333_v29 }
 0x4ad   : > { %1883 = vpow2.f32 %v1337_v31  ;;  %v1349_v15 = vmul.f32 1.442695, %v1334_v27 }
 0x4ae   : > { %1885 = vpow2.f32 %v1339_v62 }
 0x4af   : > { %1887 = vpow2.f32 %v1341_v32 }
 0x4b0   : > { %1889 = vpow2.f32 %v1343_v0 }
 0x4b1   : > { %1891 = vpow2.f32 %v1345_v4 }
 0x4b2   : > { %1893 = vpow2.f32 %v1347_v36 }
 0x4b3   : > { %1895 = vpow2.f32 %v1349_v15 }
 0x4b9   : > { %v1882_v16 = vpop.eup %1881 }
 0x4ba   : > { %v1884_v17 = vpop.eup %1883  ;;  %v1351_v10 = vmul.f32 %v1882_v16, %v2299_v3 }
 0x4bb   : > { %v1886_v28 = vpop.eup %1885  ;;  %v1352_v21 = vmul.f32 %v1884_v17, %v2293_v63 }
 0x4bc   : > { %v1888_v24 = vpop.eup %1887  ;;  %v1353_v20 = vmul.f32 %v1886_v28, %v2297_v2 }
 0x4bd   : > { %v1890_v7 = vpop.eup %1889  ;;  %v1354_v12 = vmul.f32 %v1888_v24, %v2301_v34  ;;  %v1367_v11 = vrot.slane %v1352_v21, 7 }
 0x4be   : > { %v1892_v13 = vpop.eup %1891  ;;  %v1355_v25 = vmul.f32 %v1890_v7, %v2303_v35  ;;  %v1369_v30 = vrot.slane %v1353_v20, 6 }
 0x4bf   : > { %v1894_v37 = vpop.eup %1893  ;;  %v1356_v18 = vmul.f32 %v1892_v13, %v2306_v6  ;;  %v1368_v38 = vsel %vm817_vm5, %v1367_v11, %v1351_v10  ;;  %v1371_v19 = vrot.slane %v1354_v12, 5  ;;  %v1521_v11 = vld [vmem:[%s2393_s6 + $0x18] sm:$0xff]  ;;  %v1520_v13 = vld [vmem:[%s2393_s6 + $0x10] sm:$0xff] }
 0x4c0   : > { %v1896_v63 = vpop.eup %1895  ;;  %v1357_v2 = vmul.f32 %v1894_v37, %v2308_v9  ;;  %v1370_v39 = vsel %vm820_vm6, %v1369_v30, %v1368_v38  ;;  %v1373_v3 = vrot.slane %v1355_v25, 4  ;;  %1797 = vmatpush3.msra.mxu0 %v1521_v11  ;;  %v1518_v30 = vld [vmem:[%s2393_s6] sm:$0xff] }
 0x4c1   : > { %v1358_v34 = vmul.f32 %v1896_v63, %v2310_v14  ;;  %v1372_v8 = vsel %vm823_vm7, %v1371_v19, %v1370_v39  ;;  %v1375_v22 = vrot.slane %v1356_v18, 3  ;;  %1798 = vmatprep.subr.mxu0 %v1937_v1 }
 0x4c2   : > { %v1374_v35 = vsel %vm826_vm8, %v1373_v3, %v1372_v8  ;;  %v1377_v23 = vrot.slane %v1357_v2, 2  ;;  %1799 = vmatpush3.msra.mxu0 %v1520_v13 }
 0x4c3   : > { %v1376_v6 = vsel %vm829_vm9, %v1375_v22, %v1374_v35  ;;  %v1379_v40 = vrot.slane %v1358_v34, 1  ;;  %1800 = vmatprep.subr.mxu0 %v1937_v1 }
 0x4c4   : > { %v1378_v41 = vsel %vm832_vm10, %v1377_v23, %v1376_v6 }
 0x4c5   : > { %v1380_v42 = vsel %vm835_vm11, %v1379_v40, %v1378_v41 }
 0x4c6   : > { %v1382_v9 = vsel %vm719_vm4, %v1380_v42, 0.0 }
 0x4c7   : > { %1383 = vadd.xlane.f32.xlu0 %v1382_v9 }
 0x550   : > { %v1384_v5 = vpop.xlane.xlu0 %1383 }
 0x551   : > { %v1385_v14 = vadd.f32 1e-30, %v1384_v5 }
 0x553   : > { %v1387_v44 = vrot.slane %v1385_v14, 1  ;;  %v1388_v47 = vrot.slane %v1385_v14, 2  ;;  %v1389_v50 = vrot.slane %v1385_v14, 3  ;;  %1897 = vrcp.f32 %v1385_v14 }
 0x554   : > { %v1390_v51 = vrot.slane %v1385_v14, 4  ;;  %v1391_v45 = vrot.slane %v1385_v14, 5  ;;  %v1392_v46 = vrot.slane %v1385_v14, 6  ;;  %v1393_v48 = vrot.slane %v1385_v14, 7 }
 0x555   : > { %1899 = vrcp.f32 %v1387_v44 }
 0x556   : > { %1901 = vrcp.f32 %v1388_v47 }
 0x557   : > { %1903 = vrcp.f32 %v1389_v50 }
 0x558   : > { %1905 = vrcp.f32 %v1390_v51 }
 0x559   : > { %1907 = vrcp.f32 %v1391_v45 }
 0x55a   : > { %1909 = vrcp.f32 %v1392_v46 }
 0x55b   : > { %1911 = vrcp.f32 %v1393_v48 }
 0x560   : > { %v1898_v52 = vpop.eup %1897 }
 0x561   : > { %v1403_v58 = vmul.f32 %v1898_v52, %v1351_v10 }
 0x562   : > { %v1900_v49 = vpop.eup %1899 }
 0x563   : > { %v1902_v54 = vpop.eup %1901  ;;  %v1405_v53 = vmul.f32 %v1900_v49, %v1352_v21 }
 0x564   : > { %v1904_v57 = vpop.eup %1903  ;;  %v1407_v55 = vmul.f32 %v1902_v54, %v1353_v20 }
 0x565   : > { %v1906_v56 = vpop.eup %1905  ;;  %v1409_v26 = vmul.f32 %v1904_v57, %v1354_v12  ;;  %v1426_v59 = vrot.slane %v1405_v53, 7 }
 0x566   : > { %v1908_v60 = vpop.eup %1907  ;;  %v1411_v29 = vmul.f32 %v1906_v56, %v1355_v25  ;;  %v1428_v61 = vrot.slane %v1407_v55, 6  ;;  %v1519_v25 = vld [vmem:[%s2393_s6 + $0x8] sm:$0xff] }
 0x567   : > { %v1910_v27 = vpop.eup %1909  ;;  %v1413_v31 = vmul.f32 %v1908_v60, %v1356_v18  ;;  %v1427_v62 = vsel %vm817_vm5, %v1426_v59, %v1403_v58  ;;  %v1430_v32 = vrot.slane %v1409_v26, 5  ;;  %1801 = vmatpush3.msra.mxu0 %v1519_v25  ;;  %vm2396_vm5 = vcmask 261120  }
 0x568   : > { %v1912_v0 = vpop.eup %1911  ;;  %v1415_v4 = vmul.f32 %v1910_v27, %v1357_v2  ;;  %v1429_v36 = vsel %vm820_vm6, %v1428_v61, %v1427_v62  ;;  %v1432_v15 = vrot.slane %v1411_v29, 4  ;;  %1802 = vmatprep.subr.mxu0 %v1937_v1  ;;  %vm1595_vm6 = vcmask 523264  }
 0x569   : > { %v1417_v16 = vmul.f32 %v1912_v0, %v1358_v34  ;;  %v1431_v17 = vsel %vm823_vm7, %v1430_v32, %v1429_v36  ;;  %v1434_v28 = vrot.slane %v1413_v31, 3  ;;  %1803 = vmatpush3.msra.mxu0 %v1518_v30 }
 0x56a   : > { %v1433_v21 = vsel %vm826_vm8, %v1432_v15, %v1431_v17  ;;  %v1436_v24 = vrot.slane %v1415_v4, 2 }
 0x56b   : > { %v1435_v20 = vsel %vm829_vm9, %v1434_v28, %v1433_v21  ;;  %v1438_v7 = vrot.slane %v1417_v16, 1 }
 0x56c   : > { %v1437_v10 = vsel %vm832_vm10, %v1436_v24, %v1435_v20 }
 0x56d   : > { %v1439_v12 = vsel %vm835_vm11, %v1438_v7, %v1437_v10 }
 0x56e   : > { %1794 = vmatmul.mubr.msk.f32.vlgmr.msra.gmra.mxu1 %vm719_vm4, %v1439_v12  ;;  %vm1516_vm4 = vcmask 130048  }
 0x62e   : > { %v1508_v37 = vpop.f32.mrf.mxu1 }
 0x62f   : > { %1513 = vrot.lane.b32.xlu0 %v1508_v37, %s1946_s20 }
 0x630   : > { %v1795_v18 = vpop.f32.mrf.mxu1 }
 0x6a1   : > { %v1514_v38 = vpop.permute.xlu0 %1513 }
 0x6a2   : > { %v1517_v19 = vsel %vm1516_vm4, %v2295_v33, %v1514_v38 }
 0x6a3   : > { %1805 = vmatmul.mubr.msk.f32.vlgmr.msra.gmra.mxu0 %vm2396_vm5, %v1517_v19 }
 0x763   : > { %v1591_v1 = vpop.f32.mrf.mxu0 }
 0x764   : > { %1596 = vst.msk [vmem:[%s375_s23] sm:$0xff] %vm1595_vm6, %v1591_v1 }
 0x765   : > { %v1806_v63 = vpop.f32.mrf.mxu0 }
 0x766 PF: > { %s17_s26 = sadd.s32 1, %s1935_s26   ;;  %s2397_s24 = smov %s1931_s25 }
 0x767   : > { %p14_p5 = scmp.ge.s32.totalorder %s17_s26, 4   ;;  %s2398_s25 = smov %s2400_s27 }
 0x769   :  { %16 = sbr.rel (!%p14_p5) target bundleno = 2 (0x2), region = 90 }

</bundles_post_ra>
